<compile_context>
chip_gen: v5e
topology: v5e:2x2
jax: 0.10.0
libtpu: 0.0.40
codegen_flags: <defaults>
</compile_context>

<pallas_src>
import jax
import jax.numpy as jnp
from jax.experimental import pallas as pl
from jax.experimental.pallas import tpu as pltpu


def _pos_embed_kernel(col_t_ref, row_t_ref, out_ref):
    # col_t_ref: (D, W)         transposed column (x) embeddings (resident, fetched once)
    # row_t_ref: (D, tH)        transposed row (y) embeddings for this row tile
    # out_ref:   (bB, 2D, tH*W) lane-dense channel-major slab; bB batch copies
    #                           are written from the same vregs (no recompute).
    D, W = col_t_ref.shape
    tH = row_t_ref.shape[1]
    L = tH * W
    bB = out_ref.shape[0]

    # Cast the tiny tables to the output dtype up front: bf16 intermediates are
    # half-size on v6e/v7x (free VPU cast); on f32 this is a no-op.
    x_t = col_t_ref[...].astype(out_ref.dtype)                      # (D, W)
    y_t = row_t_ref[...].astype(out_ref.dtype)                      # (D, tH)

    # One broadcast + one reshape per half (single relayout each):
    #   x half: column embedding repeats once per row  -> lane l gets x[:, l %  W]
    #   y half: row embedding constant across its row  -> lane l gets y[:, l // W]
    x_part = jnp.broadcast_to(x_t[:, None, :], (D, tH, W)).reshape(D, L)
    y_part = jnp.broadcast_to(y_t[:, :, None], (D, tH, W)).reshape(D, L)

    # Short static unroll over the packed batch copies: construction above is
    # done once per grid step; the batch "repeat" is just bB extra stores.
    for b in range(bB):
        out_ref[b, :D, :] = x_part
        out_ref[b, D:, :] = y_part


# Per-output-block byte budget (Pallas double-buffers it). 6 MiB keeps the
# double-buffered output + tiny inputs comfortably inside every generation's
# VMEM (v5e 16 MiB scoped default raised explicitly below; v7x 64 MiB physical).
_OUT_BLOCK_BUDGET = 6 * 1024 * 1024


def _pick_tiles(B, H, W, D, itemsize, budget=_OUT_BLOCK_BUDGET):
    """Choose (tH rows per step, bB batch copies per step).

    Prefers the full-height lane-dense slab (n_row_tiles == 1), then packs as
    many batch copies per step as the byte budget allows, while keeping >= 2
    grid steps so v7x's two TensorCores (and the write pipeline) both get work.
    """
    row_bytes = 2 * D * W * itemsize                # one spatial row, both halves
    if H * row_bytes <= budget:
        tH = H                                      # full-height block (always a legal BlockSpec)
    else:
        # Row-tiled: lane extent tH*W must be a multiple of 128 for legality.
        cands = [t for t in range(1, H) if H % t == 0
                 and (t * W) % 128 == 0 and t * row_bytes <= budget]
        tH = max(cands) if cands else H             # fall back to full height
    n_row_tiles = H // tH
    block_bytes = tH * row_bytes

    bcands = [b for b in range(1, B + 1) if B % b == 0 and b * block_bytes <= budget]
    bB = max(bcands) if bcands else 1
    # Keep at least 2 grid steps on a parallel axis when the problem allows it.
    if n_row_tiles == 1 and B > 1 and B // bB < 2:
        bB = max(b for b in range(1, B // 2 + 1)
                 if B % b == 0 and b * block_bytes <= budget * 2) if B >= 2 else 1
        bB = max(b for b in range(1, B // 2 + 1) if B % b == 0 and b <= bB) or 1
    return tH, bB


def table_transformer_position_embedding(row_table, col_table, batch_size, height, width,
                                          *, out_dtype=jnp.float32):
    """Pallas TPU equivalent of TableTransformerLearnedPositionEmbedding.forward.

    Only the static (batch, height, width) are needed — the result has no data
    dependency on the pixel tensor, so callers should compute it once per input
    resolution and reuse it. Returns (B, 2*D, H, W) in `out_dtype`.
    """
    B, H, W = int(batch_size), int(height), int(width)
    D = row_table.shape[-1]
    if H > row_table.shape[0] or W > col_table.shape[0]:
        raise ValueError(
            f"Spatial size ({H}, {W}) exceeds the learned position tables "
            f"({row_table.shape[0]}, {col_table.shape[0]}).")
    # Note: D % 8 (f32) / D % 16 (bf16) keeps the out_ref[D:, :] half-boundary
    # store sublane-aligned; other values remain correct but use masked stores.

    itemsize = jnp.dtype(out_dtype).itemsize
    tH, bB = _pick_tiles(B, H, W, D, itemsize)
    n_row_tiles = H // tH
    n_batch_tiles = B // bB
    L = tH * W

    # arange-indexed embedding lookup == leading slice (H, W are static). Only
    # the tiny (<=50, D) tables are touched on the host; the big channel-major
    # map is built entirely inside the kernel.
    col_t = jnp.transpose(col_table[:W])                                     # (D, W)
    row_t_tiles = jnp.transpose(
        row_table[:H].reshape(n_row_tiles, tH, D), (0, 2, 1))                # (nT, D, tH)

    out_bytes = B * 2 * D * H * W * itemsize
    in_bytes = (W * D + H * D) * jnp.dtype(row_table.dtype).itemsize

    pos = pl.pallas_call(
        _pos_embed_kernel,
        out_shape=jax.ShapeDtypeStruct((B, 2 * D, H * W), out_dtype),
        grid_spec=pltpu.PrefetchScalarGridSpec(
            num_scalar_prefetch=0,
            grid=(n_row_tiles, n_batch_tiles),                 # batch tiles innermost
            in_specs=[
                # Same block every step -> fetched once, stays resident in VMEM.
                pl.BlockSpec((D, W), lambda i, b: (0, 0)),
                # One (D, tH) row tile; changes only on the outer axis.
                pl.BlockSpec((None, D, tH), lambda i, b: (i, 0, 0)),
            ],
            # Lane-dense channel-major slab; bB batch copies per step written
            # straight from VMEM (no XLA broadcast / repeat / permute pass).
            out_specs=pl.BlockSpec((bB, 2 * D, L), lambda i, b: (b, 0, i)),
        ),
        compiler_params=pltpu.CompilerParams(
            dimension_semantics=("parallel", "parallel"),
            # Explicit limit: covers the double-buffered output block on every
            # generation (v5e scoped default is 16 MiB; stays far below v7x's
            # 64 MiB physical VMEM).
            vmem_limit_bytes=32 * 1024 * 1024,
        ),
        cost_estimate=pl.CostEstimate(
            flops=0, transcendentals=0, bytes_accessed=out_bytes + in_bytes),
    )(col_t, row_t_tiles)

    # Metadata-only reshape back to the PyTorch output layout (B, 2D, H, W).
    return pos.reshape(B, 2 * D, H, W)


def table_transformer_learned_position_embedding(pixel_values, row_table, col_table,
                                                 pixel_mask=None, *, out_dtype=jnp.float32):
    """Drop-in analogue of the PyTorch forward (only pixel_values.shape is used)."""
    B = pixel_values.shape[0]
    H, W = pixel_values.shape[-2:]
    return table_transformer_position_embedding(
        row_table, col_table, B, H, W, out_dtype=out_dtype)


def _reference(B, H, W, row_table, col_table):
    """Pure-JAX reference mirroring the PyTorch forward, for verification."""
    x_emb = col_table[jnp.arange(W)]                      # (W, D)
    y_emb = row_table[jnp.arange(H)]                      # (H, D)
    x_b = jnp.broadcast_to(x_emb[None, :, :], (H, W, x_emb.shape[-1]))
    y_b = jnp.broadcast_to(y_emb[:, None, :], (H, W, y_emb.shape[-1]))
    pos = jnp.concatenate([x_b, y_b], axis=-1)            # (H, W, 2D)
    pos = jnp.transpose(pos, (2, 0, 1))[None]             # (1, 2D, H, W)
    return jnp.broadcast_to(pos, (B,) + pos.shape[1:])


if __name__ == "__main__":
    # Small shapes consistent with the module (embedding_dim scaled down).
    B, C, H, W = 2, 4, 16, 16
    embedding_dim = 32
    max_pos = 50

    key = jax.random.PRNGKey(0)
    k_px, k_row, k_col = jax.random.split(key, 3)

    pixel_values = jax.random.normal(k_px, (B, C, H, W), dtype=jnp.float32)
    # Deterministic synthetic "learned" embedding tables (nn.Embedding(50, D)).
    row_table = jax.random.normal(k_row, (max_pos, embedding_dim), dtype=jnp.float32)
    col_table = jax.random.normal(k_col, (max_pos, embedding_dim), dtype=jnp.float32)

    expected = _reference(B, H, W, row_table, col_table)

    # f32 path (exact match with the PyTorch module).
    pos = table_transformer_learned_position_embedding(pixel_values, row_table, col_table)
    pos = jax.block_until_ready(pos)
    assert pos.shape == (B, 2 * embedding_dim, H, W), pos.shape
    assert jnp.allclose(pos, expected), "f32 mismatch vs reference"

    # bf16 output path (halves HBM writeback bytes for downstream consumers).
    pos_bf16 = table_transformer_learned_position_embedding(
        pixel_values, row_table, col_table, out_dtype=jnp.bfloat16)
    pos_bf16 = jax.block_until_ready(pos_bf16)
    assert pos_bf16.dtype == jnp.bfloat16
    assert jnp.allclose(pos_bf16.astype(jnp.float32), expected, atol=3e-2, rtol=3e-2), \
        "bf16 mismatch vs reference"

    print("KERNEL_OK")
</pallas_src>

<mosaic_0001>
module attributes {stable_mosaic.version = 11 : i64} {
  func.func @_pos_embed_kernel(%arg0: i32, %arg1: i32, %arg2: memref<32x16xf32, #tpu.memory_space<vmem>>, %arg3: memref<1x32x16xf32, #tpu.memory_space<vmem>>, %arg4: memref<1x64x256xf32, #tpu.memory_space<vmem>>) attributes {dimension_semantics = [#tpu.dimension_semantics<parallel>, #tpu.dimension_semantics<parallel>], iteration_bounds = array<i64: 1, 2>, scalar_prefetch = 0 : i64, scratch_operands = 0 : i64, tpu.core_type = #tpu.core_type<tc>, window_params = [{pipeline_mode = #tpu.pipeline_mode<synchronous>, transform_indices = @transform_0, window_bounds = array<i64: 32, 16>}, {transform_indices = @transform_1, window_bounds = array<i64: 1, 32, 16>}, {transform_indices = @transform_2, window_bounds = array<i64: 1, 64, 256>}]} {
    %c0 = arith.constant 0 : index
    %c0_0 = arith.constant 0 : index
    %0 = vector.load %arg2[%c0, %c0_0] : memref<32x16xf32, #tpu.memory_space<vmem>>, vector<32x16xf32>
    %c0_1 = arith.constant 0 : index
    %c0_2 = arith.constant 0 : index
    %c0_3 = arith.constant 0 : index
    %1 = vector.load %arg3[%c0_1, %c0_2, %c0_3] : memref<1x32x16xf32, #tpu.memory_space<vmem>>, vector<1x32x16xf32>
    %2 = vector.shape_cast %1 : vector<1x32x16xf32> to vector<32x16xf32>
    %3 = vector.shape_cast %0 : vector<32x16xf32> to vector<32x1x16xf32>
    %4 = vector.shape_cast %3 : vector<32x1x16xf32> to vector<32x1x16xf32>
    %5 = vector.broadcast %4 : vector<32x1x16xf32> to vector<32x16x16xf32>
    %6 = vector.shape_cast %5 : vector<32x16x16xf32> to vector<32x256xf32>
    %7 = vector.shape_cast %2 : vector<32x16xf32> to vector<32x16x1xf32>
    %8 = vector.shape_cast %7 : vector<32x16x1xf32> to vector<32x16x1xf32>
    %9 = vector.broadcast %8 : vector<32x16x1xf32> to vector<32x16x16xf32>
    %10 = vector.shape_cast %9 : vector<32x16x16xf32> to vector<32x256xf32>
    %c0_4 = arith.constant 0 : index
    %c0_5 = arith.constant 0 : index
    %c0_6 = arith.constant 0 : index
    %11 = vector.load %arg4[%c0_4, %c0_5, %c0_6] : memref<1x64x256xf32, #tpu.memory_space<vmem>>, vector<1x32x256xf32>
    %12 = vector.shape_cast %11 : vector<1x32x256xf32> to vector<32x256xf32>
    %13 = vector.shape_cast %6 : vector<32x256xf32> to vector<1x32x256xf32>
    tpu.vector_store %arg4[%c0_4, %c0_5, %c0_6], %13 {strides = array<i32>} : memref<1x64x256xf32, #tpu.memory_space<vmem>>, vector<1x32x256xf32>,
    %c0_7 = arith.constant 0 : index
    %c32 = arith.constant 32 : index
    %c0_8 = arith.constant 0 : index
    %14 = vector.load %arg4[%c0_7, %c32, %c0_8] : memref<1x64x256xf32, #tpu.memory_space<vmem>>, vector<1x32x256xf32>
    %15 = vector.shape_cast %14 : vector<1x32x256xf32> to vector<32x256xf32>
    %16 = vector.shape_cast %10 : vector<32x256xf32> to vector<1x32x256xf32>
    tpu.vector_store %arg4[%c0_7, %c32, %c0_8], %16 {strides = array<i32>} : memref<1x64x256xf32, #tpu.memory_space<vmem>>, vector<1x32x256xf32>,
    return
  }
  func.func @transform_0(%arg0: i32, %arg1: i32) -> (i32, i32) {
    %c0_i32 = arith.constant 0 : i32
    %c0_i32_0 = arith.constant 0 : i32
    %c0_i32_1 = arith.constant 0 : i32
    return %c0_i32, %c0_i32_0 : i32, i32
  }
  func.func @transform_1(%arg0: i32, %arg1: i32) -> (i32, i32, i32) {
    %c0_i32 = arith.constant 0 : i32
    %c0_i32_0 = arith.constant 0 : i32
    %c0_i32_1 = arith.constant 0 : i32
    return %arg0, %c0_i32, %c0_i32_0 : i32, i32, i32
  }
  func.func @transform_2(%arg0: i32, %arg1: i32) -> (i32, i32, i32) {
    %c0_i32 = arith.constant 0 : i32
    %c0_i32_0 = arith.constant 0 : i32
    return %arg1, %c0_i32, %arg0 : i32, i32, i32
  }
}

</mosaic_0001>

<bundles_post_ra>
// kernel: tpu_custom_call.1
= control target key start
LH: loop header
LB: loop body
LE: loop exit
PB: predicated region body
PF: predicated region fallthrough
CT: control target
= control target key end

     0   :  { %7 = vsyncpa [#allocation3], 0  ;;  %s4544_s0 = inlined_call_operand.vmem [shape: f32[32,16], index: 0, kind: input, shape index: {}]   ;;  %s4545_s1 = inlined_call_operand.vmem [shape: f32[1,32,16], index: 1, kind: input, shape index: {}]   ;;  %s4546_s2 = inlined_call_operand.hbm [shape: f32[2,64,256], index: 2, kind: output, shape index: {}]  }
   0x1   :  { %9 = vsyncpa [#allocation3 + $0x1], 0  ;;  %s2771_s9 = smov 0   ;;  %s2773_s10 = smov 0  }
   0x2   :  { %s2775_s11 = smov 0   ;;  %s2777_s12 = smov 0  }
   0x3   :  { %s2779_s13 = smov 0   ;;  %s2781_s14 = smov 0  }
   0x4 LB: > { %s2559_s15 = sadd.s32 4294967295, %s2744_s14   ;;  %s2560_s16 = sadd.s32 4294967294, %s2744_s14   ;;  %s2744_s14 = sphi %s2781_s14, %s15_s14   ;;  %s2740_s13 = sphi %s2779_s13, %s4733_s13   ;;  %s2736_s12 = sphi %s2777_s12, %s4732_s12   ;;  %s2732_s11 = sphi %s2775_s11, %s4731_s11   ;;  %s2728_s10 = sphi %s2773_s10, %s4730_s10   ;;  %s2724_s9 = sphi %s2771_s9, %s4729_s9  }
   0x5   : > { %s24_s17 = sadd.s32 1, %s2740_s13  ;;  %s83_s18 = sadd.s32 1, %s2732_s11 }
   0x6   : > { %p25_p0 = scmp.ge.s32.totalorder %s24_s17, 2  ;;  %p93_p1 = scmp.ne.s32.totalorder %s2732_s11, %s2728_s10 }
   0x7   : > { %p94_p2 = scmp.eq.s32.totalorder %s2559_s15, 1  ;;  %p99_p3 = scmp.ne.s32.totalorder %s2728_s10, %s2724_s9 }
   0x8   : > { %s4735_s17 = smov (%p25_p0, %s24_s17), 0  ;;  %p100_p5 = scmp.eq.s32.totalorder %s2560_s16, 1 }
   0x9   : > { %p2811_p4 = por %p94_p2, %p93_p1  ;;  %s78_s20 = ssub.s32 %s2740_s13, %s4735_s17 }
   0xa   : > { %p2563_p6 = scmp.ge.s32.totalorder %s2744_s14, 1  ;;  %p81_p7 = scmp.eq.s32.totalorder %s78_s20, 0 }
   0xb   : > { %p2818_p8 = por %p100_p5, %p99_p3  ;;  %p129_p9 = scmp.lt.s32.totalorder %s2744_s14, 3 }
   0xc   : > { %s2824_s22 = scalar_select %p81_p7, %s2732_s11, %s83_s18  }
   0xd   : > { %p130_p10 = pnand %p2563_p6, %p129_p9 }
   0xf   : > { %133 = sbr.rel (%p130_p10) target bundleno = 684 (0x2ac), region = 28 }
  0x14   : > { %v262_v0 = vlaneseq  ;;  %v161_v2 = vld [vmem:[%s4545_s1] sm:$0xff]  ;;  %v2842_v8 = vld [vmem:[%s4545_s1 + $0x8] sm:$0xff]  ;;  %v2854_v12 = vld [vmem:[%s4545_s1 + $0x10] sm:$0xff]  ;;  %v2746_v30 = vmov 1983009808   ;;  %vm678_vm0 = vcmask 1047556  }
  0x15   : > { %v287_v3 = vperm.slane %v161_v2, 2  ;;  %v274_v4 = vperm.slane %v161_v2, 1  ;;  %v261_v5 = vperm.slane %v161_v2, 0  ;;  %v313_v7 = vperm.slane %v161_v2, 4  ;;  %v2863_v14 = vld [vmem:[%s4545_s1 + $0x18] sm:$0xff]  ;;  %v2883_v24 = vld [vmem:[%s4544_s0] sm:$0xff] }
  0x16   : > { %v2826_v1 = vshrl.u32 %v262_v0, 7  ;;  %v378_v9 = vperm.slane %v2842_v8, 1  ;;  %v300_v10 = vperm.slane %v161_v2, 3  ;;  %v4554_v11 = vperm.slane %v2842_v8, 6  ;;  %v2919_v46 = vld [vmem:[%s4544_s0 + $0x18] sm:$0xff]  ;;  %s2748_s18 = smov 32  }
  0x17   : > { %v4551_v13 = vperm.slane %v2854_v12, 3  ;;  %v326_v15 = vperm.slane %v161_v2, 5  ;;  %v4548_v16 = vperm.slane %v2863_v14, 0  ;;  %v339_v17 = vperm.slane %v161_v2, 6  ;;  %s2749_s20 = smov 48   ;;  %s2750_s23 = smov 64  }
  0x18   : > { %2638 = vset.pattern.permute.xlu2 %v2826_v1  ;;  %2637 = vset.pattern.permute.xlu1 %v2826_v1  ;;  %v2835_v6 = vadd.s32 8, %v2826_v1  ;;  %v4547_v18 = vperm.slane %v2863_v14, 5  ;;  %v352_v19 = vperm.slane %v161_v2, 7  ;;  %v365_v20 = vperm.slane %v2842_v8, 0  ;;  %s2751_s24 = smov 80   ;;  %s2752_s25 = smov 96  }
  0x19   : > { %2636 = vset.pattern.permute.xlu0 %v2826_v1  ;;  %v404_v21 = vperm.slane %v2842_v8, 3  ;;  %v391_v22 = vperm.slane %v2842_v8, 2  ;;  %v4555_v23 = vperm.slane %v2854_v12, 0  ;;  %v174_v25 = vrot.slane %v2883_v24, 6  ;;  %s2753_s26 = smov 112   ;;  %s2754_s27 = smov 16  }
  0x1a   : > { %v170_v26 = vrot.slane %v2883_v24, 2  ;;  %v172_v27 = vrot.slane %v2883_v24, 4  ;;  %v175_v28 = vrot.slane %v2883_v24, 7  ;;  %v683_v31 = vunpack.c.l.s4 %v2746_v30  ;;  %s148_s30 = sand.u32 1, %s2728_s10   ;;  %s2570_s5 = sshll.u32 %s2736_s12, 7 }
  0x1b   : > { %v2892_v29 = vperm.slane %v174_v25, 0  ;;  %v171_v32 = vrot.slane %v2883_v24, 3  ;;  %v173_v33 = vrot.slane %v2883_v24, 5  ;;  %v4552_v36 = vperm.slane %v2854_v12, 5  ;;  %s2564_s3 = sshll.u32 %s148_s30, 7  ;;  %s2479_s8 = scalar_lea.hbm %s4546_s2, %s2570_s5 }
  0x1c   : > { %v2898_v34 = vperm.slane %v170_v26, 0  ;;  %v2900_v35 = vperm.slane %v172_v27, 0  ;;  %v2903_v37 = vperm.slane %v175_v28, 0  ;;  %v169_v39 = vrot.slane %v2883_v24, 1  ;;  %s4338_s4 = scalar_lea.vmem [#allocation2], %s2564_s3  ;;  %s2482_s15 = sshll.u32 %s2479_s8, 4  ;;  %s2483_s15 = int_to_ptr.hbm [resolvable:$true] %s2482_s15 }
  0x1d   : > { %v702_v38 = vrot.slane %v2892_v29, 4  ;;  %v4557_v40 = vperm.slane %v2883_v24, 0  ;;  %v2908_v41 = vperm.slane %v171_v32, 0  ;;  %v2910_v42 = vperm.slane %v173_v33, 0  ;;  %s2480_s12 = sshll.u32 %s4338_s4, 4  ;;  %s2466_s16 = scalar_lea.sflag [#allocation3], %s148_s30  ;;  %s2481_s12 = int_to_ptr.vmem [resolvable:$true] %s2480_s12 }
  0x1e   : > { %v677_v43 = vrot.slane %v2898_v34, 4  ;;  %v714_v45 = vrot.slane %v2903_v37, 4  ;;  %v2921_v47 = vunpack.c.0.s8 %v683_v31  ;;  %v2923_v48 = vperm.slane %v169_v39, 0 }
  0x1f   : > { %v703_v44 = vsel %vm678_vm0, %v702_v38, %v2900_v35  ;;  %v690_v49 = vrot.slane %v2908_v41, 4  ;;  %v195_v50 = vrot.slane %v2919_v46, 6  ;;  %v191_v54 = vrot.slane %v2919_v46, 2 }
  0x20   : > { %292 = vperm.xlu2 %2638, %v287_v3   ;;  %279 = vperm.xlu1 %2637, %v274_v4   ;;  %v679_v51 = vsel %vm678_vm0, %v677_v43, %v4557_v40  ;;  %v2933_v52 = vperm.slane %v703_v44, %v2921_v47  ;;  %v715_v53 = vsel %vm678_vm0, %v714_v45, %v2910_v42  ;;  %v193_v55 = vrot.slane %v2919_v46, 4 }
  0x21   : > { %266 = vperm.xlu0 %2636, %v261_v5   ;;  %v2747_v56 = vmov 1934713408   ;;  %v192_v58 = vrot.slane %v2919_v46, 3  ;;  %v194_v59 = vrot.slane %v2919_v46, 5  ;;  %v196_v60 = vrot.slane %v2919_v46, 7 }
  0x22   : > { %4598 = vst [vmem:[#allocation5_spill] sm:$0xff] %v2933_v52  ;;  %v731_v57 = vunpack.c.l.s4 %v2747_v56  ;;  %v2945_v61 = vperm.slane %v679_v51, %v2921_v47  ;;  %v691_v62 = vsel %vm678_vm0, %v690_v49, %v2923_v48  ;;  %v2949_v63 = vperm.slane %v191_v54, 0 }
  0x23   : > { %v2951_v0 = vperm.slane %v195_v50, 0  ;;  %v2954_v2 = vperm.slane %v715_v53, %v2921_v47  ;;  %v2976_v25 = vperm.slane %v691_v62, %v2921_v47  ;;  %v417_v44 = vperm.slane %v2842_v8, 4 }
  0x24   : > { %4599 = vst [vmem:[#allocation6_spill] sm:$0xff] %v2945_v61  ;;  %v728_v26 = vrot.slane %v2945_v61, 4  ;;  %v2979_v27 = vunpack.c.0.s8 %v731_v57  ;;  %v4550_v51 = vperm.slane %v2863_v14, 7  ;;  %vm1238_vm1 = vcmask 130048  }
  0x25   : > { %4600 = vst [vmem:[#allocation7_spill] sm:$0xff] %v2954_v2  ;;  %vm1243_vm2 = vcmask 261120   ;;  %vm1248_vm3 = vcmask 392192   ;;  %vm1253_vm4 = vcmask 523264   ;;  %vm1258_vm5 = vcmask 654336  }
  0x26   : > { %v729_v53 = vsel %vm678_vm0, %v2976_v25, %v728_v26  ;;  %vm1268_vm6 = vcmask 916480   ;;  %vm1263_vm7 = vcmask 785408  }
  0x28   : > { %2641 = vset.pattern.permute.xlu2 %v2835_v6  ;;  %2639 = vset.pattern.permute.xlu1 %v2835_v6 }
  0x29   : > { %318 = vperm.xlu0 %2636, %v313_v7  }
  0x30   : > { %298 = vperm.xlu2 %2641, %v287_v3   ;;  %285 = vperm.xlu1 %2639, %v274_v4   ;;  %v752_v3 = vrot.slane %v2933_v52, 4  ;;  %v190_v4 = vrot.slane %v2919_v46, 1 }
  0x31   : > { %383 = vperm.xlu0 %2636, %v378_v9  }
  0x32   : > { %v753_v31 = vsel %vm678_vm0, %v2954_v2, %v752_v3  ;;  %v2989_v32 = vperm.slane %v190_v4, 0 }
  0x33   : > { %v3012_v54 = vperm.slane %v753_v31, %v2979_v27 }
  0x35   : > { %4602 = vst [vmem:[#allocation9_spill] sm:$0xff] %v3012_v54 }
  0x38   : > { %311 = vperm.xlu2 %2641, %v300_v10   ;;  %2640 = vset.pattern.permute.xlu1 %v2826_v1 }
  0x39   : > { %448 = vperm.xlu0 %2636, %v4554_v11  }
  0x40   : > { %2643 = vset.pattern.permute.xlu2 %v2826_v1  ;;  %305 = vperm.xlu1 %2640, %v300_v10   ;;  %v2962_v10 = vperm.slane %v192_v58, 0 }
  0x41   : > { %513 = vperm.xlu0 %2636, %v4551_v13  }
  0x42   : > { %v1026_v33 = vrot.slane %v2962_v10, 4 }
  0x44   : > { %v1027_v57 = vsel %vm678_vm0, %v1026_v33, %v2989_v32 }
  0x48   : > { %331 = vperm.xlu2 %2643, %v326_v15   ;;  %2642 = vset.pattern.permute.xlu1 %v2835_v6 }
  0x49   : > { %578 = vperm.xlu0 %2636, %v4548_v16  }
  0x50   : > { %344 = vperm.xlu2 %2643, %v339_v17   ;;  %324 = vperm.xlu1 %2642, %v313_v7   ;;  %v4549_v7 = vperm.slane %v2863_v14, 2 }
  0x51   : > { %643 = vperm.xlu0 %2636, %v4547_v18  }
  0x58   : > { %2645 = vset.pattern.permute.xlu2 %v2835_v6  ;;  %337 = vperm.xlu1 %2642, %v326_v15   ;;  %v2964_v15 = vperm.slane %v196_v60, 0 }
  0x59   : > { %2662 = vset.pattern.permute.xlu0 %v2835_v6 }
  0x5a   : > { %v1050_v28 = vrot.slane %v2964_v15, 4 }
  0x60   : > { %363 = vperm.xlu2 %2645, %v352_v19   ;;  %2644 = vset.pattern.permute.xlu1 %v2826_v1 }
  0x61   : > { %272 = vperm.xlu0 %2662, %v261_v5   ;;  %v2958_v5 = vperm.slane %v193_v55, 0 }
  0x68   : > { %376 = vperm.xlu2 %2645, %v365_v20   ;;  %357 = vperm.xlu1 %2644, %v352_v19   ;;  %v1014_v19 = vrot.slane %v2949_v63, 4 }
  0x69   : > { %350 = vperm.xlu0 %2662, %v339_v17   ;;  %v2966_v17 = vperm.slane %v194_v59, 0 }
  0x6b   : > { %v1051_v45 = vsel %vm678_vm0, %v1050_v28, %v2966_v17 }
  0x6c   : > { %v3023_v60 = vperm.slane %v1051_v45, %v2921_v47 }
  0x6e   : > { %4604 = vst [vmem:[#allocation11_spill] sm:$0xff] %v3023_v60 }
  0x70   : > { %2647 = vset.pattern.permute.xlu2 %v2826_v1  ;;  %370 = vperm.xlu1 %2644, %v365_v20   ;;  %v1038_v20 = vrot.slane %v2951_v0, 4 }
  0x71   : > { %415 = vperm.xlu0 %2662, %v404_v21  }
  0x72   : > { %v1039_v38 = vsel %vm678_vm0, %v1038_v20, %v2958_v5 }
  0x73   : > { %v3000_v43 = vperm.slane %v1039_v38, %v2921_v47 }
  0x75   : > { %4601 = vst [vmem:[#allocation8_spill] sm:$0xff] %v3000_v43  ;;  %v1088_v62 = vrot.slane %v3000_v43, 4 }
  0x78   : > { %396 = vperm.xlu2 %2647, %v391_v22   ;;  %2646 = vset.pattern.permute.xlu1 %v2835_v6 }
  0x79   : > { %480 = vperm.xlu0 %2662, %v4555_v23  }
  0x7a   : > { %v2982_v30 = vpop.permute.xlu2 %292 }
  0x80   : > { %409 = vperm.xlu2 %2647, %v404_v21   ;;  %389 = vperm.xlu1 %2646, %v378_v9   ;;  %v4556_v9 = vperm.slane %v2919_v46, 0  ;;  %v2973_v21 = vld [vmem:[%s4544_s0 + $0x10] sm:$0xff] }
  0x81   : > { %545 = vperm.xlu0 %2662, %v4552_v36   ;;  %v183_v49 = vrot.slane %v2973_v21, 1  ;;  %v185_v50 = vrot.slane %v2973_v21, 3  ;;  %v186_v55 = vrot.slane %v2973_v21, 4  ;;  %v188_v58 = vrot.slane %v2973_v21, 6 }
  0x82   : > { %v1015_v39 = vsel %vm678_vm0, %v1014_v19, %v4556_v9  ;;  %v189_v59 = vrot.slane %v2973_v21, 7  ;;  %v4553_v3 = vperm.slane %v2973_v21, 0  ;;  %v3030_v19 = vperm.slane %v729_v53, %v2979_v27 }
  0x83   : > { %v3016_v56 = vperm.slane %v1015_v39, %v2921_v47  ;;  %v187_v20 = vrot.slane %v2973_v21, 5  ;;  %v3033_v26 = vperm.slane %v183_v49, 0  ;;  %v3035_v28 = vperm.slane %v185_v50, 0 }
  0x84   : > { %4605 = vst [vmem:[#allocation12_spill] sm:$0xff] %v3030_v19  ;;  %v3037_v31 = vperm.slane %v186_v55, 0  ;;  %v3039_v33 = vperm.slane %v188_v58, 0  ;;  %v3041_v38 = vperm.slane %v189_v59, 0  ;;  %v3049_v49 = vperm.slane %v1027_v57, %v2921_v47 }
  0x85   : > { %4603 = vst [vmem:[#allocation10_spill] sm:$0xff] %v3016_v56  ;;  %v1064_v50 = vrot.slane %v3016_v56, 4  ;;  %v914_v53 = vrot.slane %v3035_v28, 4  ;;  %v1089_v55 = vsel %vm678_vm0, %v3023_v60, %v1088_v62  ;;  %v3061_v18 = vperm.slane %v187_v20, 0  ;;  %v3077_v20 = vld [vmem:[%s4544_s0 + $0x8] sm:$0xff] }
  0x86   : > { %v926_v59 = vrot.slane %v3039_v33, 4  ;;  %v430_v62 = vperm.slane %v2842_v8, 5  ;;  %v176_v36 = vrot.slane %v3077_v20, 1  ;;  %v178_v11 = vrot.slane %v3077_v20, 3 }
  0x87   : > { %v915_v16 = vsel %vm678_vm0, %v914_v53, %v3033_v26  ;;  %v1065_v53 = vsel %vm678_vm0, %v3049_v49, %v1064_v50  ;;  %v179_v23 = vrot.slane %v3077_v20, 4  ;;  %v181_v9 = vrot.slane %v3077_v20, 6 }
  0x88   : > { %2649 = vset.pattern.permute.xlu2 %v2835_v6  ;;  %402 = vperm.xlu1 %2646, %v391_v22   ;;  %v184_v22 = vrot.slane %v2973_v21, 2  ;;  %v927_v13 = vsel %vm678_vm0, %v926_v59, %v3037_v31  ;;  %v177_v40 = vrot.slane %v3077_v20, 2  ;;  %v3114_v43 = vperm.slane %v178_v11, 0 }
  0x89   : > { %610 = vperm.xlu0 %2662, %v4549_v7   ;;  %v938_v7 = vrot.slane %v3041_v38, 4  ;;  %v3091_v59 = vperm.slane %v927_v13, %v2921_v47  ;;  %v3103_v13 = vperm.slane %v1065_v53, %v2979_v27  ;;  %v3124_v2 = vperm.slane %v181_v9, 0 }
  0x8a   : > { %v3027_v4 = vperm.slane %v184_v22, 0  ;;  %v3044_v45 = vpop.permute.xlu2 %298  ;;  %v778_v22 = vrot.slane %v3012_v54, 4  ;;  %v3120_v54 = vperm.slane %v179_v23, 0  ;;  %v4612_v11 = vperm.slane %v3077_v20, 0 }
  0x8b   : > { %4609 = vst [vmem:[#allocation16_spill] sm:$0xff] %v3091_v59  ;;  %v976_v52 = vrot.slane %v3091_v59, 4  ;;  %v692_v56 = vrot.slane %v2923_v48, 4 }
  0x8c   : > { %v902_v39 = vrot.slane %v3027_v4, 4  ;;  %4610 = vst [vmem:[#allocation17_spill] sm:$0xff] %v3103_v13  ;;  %v792_v59 = vrot.slane %v4612_v11, 4  ;;  %v816_v23 = vrot.slane %v3120_v54, 4 }
  0x8e   : > { %v903_v58 = vsel %vm678_vm0, %v902_v39, %v4553_v3  ;;  %v779_v39 = vsel %vm678_vm0, %v778_v22, %v3030_v19  ;;  %v3088_v3 = vperm.slane %v915_v16, %v2921_v47  ;;  %v939_v22 = vsel %vm678_vm0, %v938_v7, %v3061_v18 }
  0x8f   : > { %v3064_v57 = vperm.slane %v903_v58, %v2921_v47  ;;  %v3084_v58 = vperm.slane %v1089_v55, %v2979_v27  ;;  %v180_v55 = vrot.slane %v3077_v20, 5  ;;  %v182_v16 = vrot.slane %v3077_v20, 7 }
  0x90   : > { %428 = vperm.xlu2 %2649, %v417_v44   ;;  %2648 = vset.pattern.permute.xlu1 %v2826_v1  ;;  %4608 = vst [vmem:[#allocation15_spill] sm:$0xff] %v3088_v3  ;;  %v3106_v19 = vperm.slane %v176_v36, 0 }
  0x91   : > { %675 = vperm.xlu0 %2662, %v4550_v51   ;;  %4606 = vst [vmem:[#allocation13_spill] sm:$0xff] %v3064_v57  ;;  %v952_v50 = vrot.slane %v3064_v57, 4  ;;  %v1114_v7 = vrot.slane %v3084_v58, 4  ;;  %v3111_v57 = vperm.slane %v939_v22, %v2921_v47  ;;  %v3122_v36 = vperm.slane %v180_v55, 0 }
  0x92   : > { %4607 = vst [vmem:[#allocation14_spill] sm:$0xff] %v3084_v58  ;;  %v3128_v58 = vperm.slane %v177_v40, 0  ;;  %v3130_v22 = vperm.slane %v182_v16, 0  ;;  %v804_v61 = vrot.slane %v3106_v19, 4  ;;  %v817_v16 = vsel %vm678_vm0, %v3124_v2, %v816_v23 }
  0x93   : > { %v3069_v51 = vpop.permute.xlu0 %266  ;;  %4611 = vst [vmem:[#allocation18_spill] sm:$0xff] %v3111_v57  ;;  %v953_v53 = vsel %vm678_vm0, %v3088_v3, %v952_v50  ;;  %v828_v50 = vrot.slane %v3122_v36, 4  ;;  %v1115_v40 = vsel %vm678_vm0, %v1114_v7, %v3103_v13  ;;  %v977_v48 = vsel %vm678_vm0, %v3111_v57, %v976_v52 }
  0x94   : > { %v805_v9 = vsel %vm678_vm0, %v3114_v43, %v804_v61  ;;  %v3143_v55 = vperm.slane %v953_v53, %v2979_v27  ;;  %v793_v3 = vsel %vm678_vm0, %v3128_v58, %v792_v59  ;;  %v3161_v53 = vperm.slane %v817_v16, %v2921_v47 }
  0x95   : > { %v829_v11 = vsel %vm678_vm0, %v3130_v22, %v828_v50  ;;  %v3154_v61 = vperm.slane %v805_v9, %v2921_v47  ;;  %v4614_v23 = vperm.slane %v2883_v24, 0  ;;  %v693_v52 = vsel %vm678_vm0, %v2908_v41, %v692_v56 }
  0x96   : > { %4613 = vst [vmem:[#allocation19_spill] sm:$0xff] %v3143_v55  ;;  %v3157_v7 = vperm.slane %v829_v11, %v2921_v47  ;;  %v716_v59 = vrot.slane %v2910_v42, 4  ;;  %v3170_v11 = vpop.permute.xlu1 %279  ;;  %v1004_v16 = vrot.slane %v3143_v55, 4  ;;  %v3179_v24 = vperm.slane %v793_v3, %v2921_v47 }
  0x97   : > { %v680_v50 = vrot.slane %v4614_v23, 4  ;;  %v850_v41 = vrot.slane %v3154_v61, 4  ;;  %v3185_v42 = vperm.slane %v693_v52, %v2921_v47  ;;  %v704_v56 = vrot.slane %v2900_v35, 4 }
  0x98   : > { %441 = vperm.xlu2 %2649, %v430_v62   ;;  %422 = vperm.xlu1 %2648, %v417_v44   ;;  %v3116_v44 = vpop.permute.xlu2 %311  ;;  %v874_v9 = vrot.slane %v3157_v7, 4  ;;  %v1028_v57 = vrot.slane %v2989_v32, 4 }
  0x99   : > { %1146 = vrot.lane.b32.xlu0 %v779_v39, %s2748_s18  ;;  %4615 = vst [vmem:[#allocation20_spill] sm:$0xff] %v3185_v42  ;;  %v681_v55 = vsel %vm678_vm0, %v2898_v34, %v680_v50  ;;  %v851_v32 = vsel %vm678_vm0, %v850_v41, %v3179_v24  ;;  %v705_v34 = vsel %vm678_vm0, %v2892_v29, %v704_v56  ;;  %v738_v50 = vrot.slane %v3185_v42, 4 }
  0x9a   : > { %v875_v3 = vsel %vm678_vm0, %v874_v9, %v3161_v53  ;;  %v4619_v9 = vperm.slane %v2919_v46, 0  ;;  %v3227_v56 = vperm.slane %v851_v32, %v2979_v27  ;;  %v3231_v46 = vperm.slane %v705_v34, %v2921_v47 }
  0x9b   : > { %v3126_v39 = vpop.permute.xlu0 %318  ;;  %v3200_v35 = vperm.slane %v875_v3, %v2979_v27  ;;  %v1040_v32 = vrot.slane %v2958_v5, 4 }
  0x9c   : > { %v1307_v60 = vrot.slane %v3126_v39, 4  ;;  %4620 = vst [vmem:[#allocation24_spill] sm:$0xff] %v3227_v56 }
  0x9d   : > { %4616 = vst [vmem:[#allocation21_spill] sm:$0xff] %v3200_v35  ;;  %v894_v3 = vrot.slane %v3200_v35, 4 }
  0x9e   : > { %4621 = vst [vmem:[#allocation25_spill] sm:$0xff] %v3231_v46 }
  0xa0   : > { %2651 = vset.pattern.permute.xlu2 %v2826_v1  ;;  %435 = vperm.xlu1 %2648, %v430_v62   ;;  %v3175_v62 = vperm.slane %v977_v48, %v2979_v27  ;;  %v4573_v48 = vperm.slane %v2842_v8, 7 }
  0xa1   : > { %1152 = vrot.lane.b32.xlu0 %v1115_v40, %s2748_s18  ;;  %v717_v40 = vsel %vm678_vm0, %v2903_v37, %v716_v59  ;;  %v3208_v59 = vperm.slane %v681_v55, %v2921_v47  ;;  %v1052_v55 = vrot.slane %v2966_v17, 4 }
  0xa2   : > { %v3172_v13 = vpop.permute.xlu2 %331  ;;  %v1005_v52 = vsel %vm678_vm0, %v3175_v62, %v1004_v16  ;;  %v3203_v37 = vperm.slane %v717_v40, %v2921_v47  ;;  %v1016_v16 = vrot.slane %v4619_v9, 4  ;;  %v1029_v40 = vsel %vm678_vm0, %v2962_v10, %v1028_v57  ;;  %v3222_v41 = vpop.permute.xlu1 %285 }
  0xa3   : > { %v3181_v23 = vpop.permute.xlu0 %383  ;;  %4618 = vst [vmem:[#allocation23_spill] sm:$0xff] %v3208_v59  ;;  %v739_v17 = vsel %vm678_vm0, %v738_v50, %v3208_v59  ;;  %v1053_v35 = vsel %vm678_vm0, %v2964_v15, %v1052_v55  ;;  %v895_v50 = vsel %vm678_vm0, %v894_v3, %v3227_v56  ;;  %v4627_v55 = vperm.slane %v2973_v21, 0 }
  0xa4   : > { %4617 = vst [vmem:[#allocation22_spill] sm:$0xff] %v3203_v37  ;;  %v762_v9 = vrot.slane %v3203_v37, 4  ;;  %v1017_v34 = vsel %vm678_vm0, %v2949_v63, %v1016_v16  ;;  %v1041_v63 = vsel %vm678_vm0, %v2951_v0, %v1040_v32  ;;  %v3267_v15 = vperm.slane %v1053_v35, %v2921_v47 }
  0xa5   : > { %v3262_v42 = vperm.slane %v1017_v34, %v2921_v47  ;;  %v4626_v16 = vperm.slane %v2842_v8, 6  ;;  %v904_v3 = vrot.slane %v4627_v55, 4  ;;  %v3288_v21 = vperm.slane %v1041_v63, %v2921_v47 }
  0xa6   : > { %v763_v5 = vsel %vm678_vm0, %v762_v9, %v3231_v46  ;;  %4624 = vst [vmem:[#allocation28_spill] sm:$0xff] %v3267_v15 }
  0xa7   : > { %4623 = vst [vmem:[#allocation27_spill] sm:$0xff] %v3262_v42  ;;  %v3284_v32 = vperm.slane %v763_v5, %v2979_v27 }
  0xa8   : > { %461 = vperm.xlu2 %2651, %v4573_v48   ;;  %2650 = vset.pattern.permute.xlu1 %v2835_v6  ;;  %v1281_v48 = vrot.slane %v2982_v30, 4  ;;  %4628 = vst [vmem:[#allocation29_spill] sm:$0xff] %v3288_v21 }
  0xa9   : > { %1166 = vrot.lane.b32.xlu0 %v1005_v52, %s2749_s20  ;;  %v3243_v52 = vperm.slane %v1029_v40, %v2921_v47  ;;  %v3257_v40 = vperm.slane %v739_v17, %v2979_v27  ;;  %v940_v17 = vrot.slane %v3061_v18, 4  ;;  %v1098_v18 = vrot.slane %v3267_v15, 4 }
  0xaa   : > { %v3224_v29 = vpop.permute.xlu2 %344  ;;  %v1282_v37 = vsel %vm678_vm0, %v1281_v48, %v3069_v51  ;;  %v4625_v48 = vperm.slane %v2854_v12, 0  ;;  %v495_v15 = vperm.slane %v2854_v12, 2 }
  0xab   : > { %v3236_v10 = vsel %vm678_vm0, %v3224_v29, %v1307_v60  ;;  %v3238_v57 = vpop.permute.xlu0 %448  ;;  %4622 = vst [vmem:[#allocation26_spill] sm:$0xff] %v3243_v52  ;;  %v928_v60 = vrot.slane %v3037_v31, 4  ;;  %v1074_v31 = vrot.slane %v3243_v52, 4  ;;  %v3281_v0 = vperm.slane %v1282_v37, %v2921_v47 }
  0xac   : > { %v784_v34 = vrot.slane %v3257_v40, 4  ;;  %v905_v37 = vsel %vm678_vm0, %v3027_v4, %v904_v3  ;;  %v941_v5 = vsel %vm678_vm0, %v3041_v38, %v940_v17  ;;  %v1295_v52 = vrot.slane %v3170_v11, 4 }
  0xad   : > { %v929_v9 = vsel %vm678_vm0, %v3039_v33, %v928_v60  ;;  %v1075_v33 = vsel %vm678_vm0, %v1074_v31, %v3262_v42  ;;  %v1331_v31 = vrot.slane %v3281_v0, 4  ;;  %v3317_v38 = vperm.slane %v905_v37, %v2921_v47 }
  0xae   : > { %v3294_v60 = vperm.slane %v929_v9, %v2921_v47  ;;  %v785_v9 = vsel %vm678_vm0, %v3284_v32, %v784_v34  ;;  %v3312_v4 = vperm.slane %v1075_v33, %v2979_v27  ;;  %v3320_v3 = vperm.slane %v941_v5, %v2921_v47 }
  0xaf   : > { %4631 = vst [vmem:[#allocation32_spill] sm:$0xff] %v3317_v38 }
  0xb0   : > { %474 = vperm.xlu2 %2651, %v4625_v48   ;;  %454 = vperm.xlu1 %2650, %v4626_v16   ;;  %4629 = vst [vmem:[#allocation30_spill] sm:$0xff] %v3294_v60  ;;  %v988_v17 = vrot.slane %v3294_v60, 4  ;;  %v1120_v37 = vrot.slane %v3312_v4, 4 }
  0xb1   : > { %1180 = vrot.lane.b32.xlu0 %v895_v50, %s2750_s23  ;;  %v916_v50 = vrot.slane %v3033_v26, 4  ;;  %4630 = vst [vmem:[#allocation31_spill] sm:$0xff] %v3312_v4  ;;  %v1099_v26 = vsel %vm678_vm0, %v1098_v18, %v3288_v21 }
  0xb2   : > { %v306_v35 = vpop.permute.xlu1 %305  ;;  %4632 = vst [vmem:[#allocation33_spill] sm:$0xff] %v3320_v3  ;;  %v3334_v18 = vperm.slane %v1099_v26, %v2979_v27 }
  0xb3   : > { %v1293_v48 = vrot.slane %v306_v35, 4  ;;  %v3303_v16 = vpop.permute.xlu0 %513  ;;  %v917_v34 = vsel %vm678_vm0, %v3035_v28, %v916_v50  ;;  %v989_v28 = vsel %vm678_vm0, %v3320_v3, %v988_v17  ;;  %v482_v50 = vperm.slane %v2854_v12, 1 }
  0xb4   : > { %4634 = vst [vmem:[#allocation34_spill] sm:$0xff] %v3334_v18  ;;  %v3338_v5 = vperm.slane %v917_v34, %v2921_v47 }
  0xb5   : > { %v1294_v63 = vsel %vm678_vm0, %v1293_v48, %v3170_v11  ;;  %v4633_v48 = vperm.slane %v2842_v8, 7  ;;  %v964_v8 = vrot.slane %v3317_v38, 4 }
  0xb6   : > { %v3307_v55 = vperm.slane %v1294_v63, %v2921_v47  ;;  %v1121_v63 = vsel %vm678_vm0, %v3334_v18, %v1120_v37 }
  0xb7   : > { %v965_v26 = vsel %vm678_vm0, %v3338_v5, %v964_v8 }
  0xb8   : > { %2653 = vset.pattern.permute.xlu2 %v2835_v6  ;;  %467 = vperm.xlu1 %2650, %v4633_v48   ;;  %v3330_v33 = vsel %vm678_vm0, %v3307_v55, %v1331_v31  ;;  %v3347_v31 = vperm.slane %v989_v28, %v2979_v27  ;;  %v852_v48 = vrot.slane %v3179_v24, 4  ;;  %v3359_v37 = vperm.slane %v965_v26, %v2979_v27 }
  0xb9   : > { %1194 = vrot.lane.b32.xlu0 %v785_v9, %s2751_s24  ;;  %v876_v24 = vrot.slane %v3161_v53, 4 }
  0xba   : > { %4635 = vst [vmem:[#allocation35_spill] sm:$0xff] %v3347_v31  ;;  %v364_v34 = vpop.permute.xlu2 %363  ;;  %v1010_v28 = vrot.slane %v3347_v31, 4  ;;  %v853_v8 = vsel %vm678_vm0, %v3154_v61, %v852_v48 }
  0xbb   : > { %v3349_v9 = vpop.permute.xlu0 %578  ;;  %4637 = vst [vmem:[#allocation37_spill] sm:$0xff] %v3359_v37  ;;  %v3371_v21 = vperm.slane %v853_v8, %v2979_v27  ;;  %v877_v61 = vsel %vm678_vm0, %v3157_v7, %v876_v24  ;;  %v1743_v7 = vrot.slane %v3222_v41, 4  ;;  %v1329_v8 = vrot.slane %v3307_v55, 4 }
  0xbc   : > { %4636 = vst [vmem:[#allocation36_spill] sm:$0xff] %v3349_v9  ;;  %v1283_v9 = vrot.slane %v3069_v51, 4  ;;  %v1296_v51 = vsel %vm678_vm0, %v306_v35, %v1295_v52  ;;  %v1741_v35 = vrot.slane %v3116_v44, 4  ;;  %v1729_v55 = vrot.slane %v3044_v45, 4 }
  0xbd   : > { %4638 = vst [vmem:[#allocation38_spill] sm:$0xff] %v3371_v21  ;;  %v1304_v48 = vperm.slane %v1296_v51, %v2921_v47  ;;  %v900_v52 = vrot.slane %v3371_v21, 4 }
  0xbe   : > { %v1284_v26 = vsel %vm678_vm0, %v2982_v30, %v1283_v9  ;;  %v3386_v30 = vperm.slane %v877_v61, %v2979_v27  ;;  %v1744_v61 = vsel %vm678_vm0, %v3116_v44, %v1743_v7  ;;  %v1330_v44 = vsel %vm678_vm0, %v1329_v8, %v3281_v0 }
  0xbf   : > { %v1292_v11 = vperm.slane %v1284_v26, %v2921_v47  ;;  %v1341_v26 = vrot.slane %v1304_v48, 4  ;;  %v4585_v0 = vperm.slane %v2854_v12, 4 }
  0xc0   : > { %493 = vperm.xlu2 %2653, %v482_v50   ;;  %2652 = vset.pattern.permute.xlu1 %v2826_v1  ;;  %4640 = vst [vmem:[#allocation40_spill] sm:$0xff] %v3386_v30  ;;  %v901_v51 = vsel %vm678_vm0, %v3386_v30, %v900_v52  ;;  %v3409_v52 = vperm.slane %v1744_v61, %v2921_v47 }
  0xc1   : > { %1200 = vrot.lane.b32.xlu0 %v1121_v63, %s2751_s24  ;;  %v1011_v63 = vsel %vm678_vm0, %v1010_v28, %v3359_v37  ;;  %v1343_v24 = vrot.slane %v1292_v11, 4  ;;  %v1765_v37 = vrot.slane %v364_v34, 4  ;;  %v1342_v7 = vsel %vm678_vm0, %v1341_v26, %v1292_v11 }
  0xc2   : > { %v3356_v17 = vpop.permute.xlu1 %324  ;;  %v3383_v28 = vpop.permute.xlu2 %376  ;;  %v3433_v11 = vperm.slane %v3330_v33, %v2979_v27  ;;  %v1407_v26 = vrot.slane %v3181_v23, 4 }
  0xc3   : > { %v3378_v53 = vpop.permute.xlu0 %643 }
  0xc4   : > { %4639 = vst [vmem:[#allocation39_spill] sm:$0xff] %v3378_v53 }
  0xc8   : > { %506 = vperm.xlu2 %2653, %v495_v15   ;;  %487 = vperm.xlu1 %2652, %v482_v50   ;;  %v1305_v50 = vrot.slane %v3224_v29, 4  ;;  %v1344_v29 = vsel %vm678_vm0, %v1304_v48, %v1343_v24 }
  0xc9   : > { %1214 = vrot.lane.b32.xlu0 %v1011_v63, %s2752_s25  ;;  %v1742_v63 = vsel %vm678_vm0, %v1741_v35, %v3222_v41  ;;  %v3425_v8 = vperm.slane %v1344_v29, %v2979_v27  ;;  %v1789_v29 = vrot.slane %v3409_v52, 4 }
  0xca   : > { %v338_v9 = vpop.permute.xlu1 %337  ;;  %v1306_v31 = vsel %vm678_vm0, %v1305_v50, %v3126_v39  ;;  %v1748_v41 = vperm.slane %v1742_v63, %v2921_v47  ;;  %v3413_v39 = vperm.slane %v3236_v10, %v2921_v47 }
  0xcb   : > { %v1767_v53 = vrot.slane %v338_v9, 4  ;;  %v3420_v35 = vperm.slane %v1306_v31, %v2921_v47 }
  0xcc   : > { %v1777_v61 = vrot.slane %v1748_v41, 4  ;;  %v1367_v33 = vrot.slane %v3413_v39, 4 }
  0xcd   : > { %v1768_v50 = vsel %vm678_vm0, %v364_v34, %v1767_v53  ;;  %v3440_v53 = vperm.slane %v1342_v7, %v2979_v27  ;;  %v1383_v7 = vrot.slane %v3433_v11, 4 }
  0xd0   : > { %2655 = vset.pattern.permute.xlu2 %v2826_v1  ;;  %500 = vperm.xlu1 %2652, %v495_v15   ;;  %v1766_v15 = vsel %vm678_vm0, %v1765_v37, %v338_v9  ;;  %v3429_v37 = vperm.slane %v1330_v44, %v2979_v27  ;;  %v1319_v9 = vrot.slane %v3172_v13, 4  ;;  %v1355_v44 = vrot.slane %v3420_v35, 4 }
  0xd1   : > { %1228 = vrot.lane.b32.xlu0 %v901_v51, %s2753_s26  ;;  %v3436_v31 = vperm.slane %v1766_v15, %v2921_v47  ;;  %v3445_v51 = vperm.slane %v1768_v50, %v2921_v47 }
  0xd2   : > { %v3416_v48 = vpop.permute.xlu2 %396  ;;  %v1379_v15 = vrot.slane %v3429_v37, 4 }
  0xd3   : > { %v273_v24 = vpop.permute.xlu0 %272 }
  0xd4   : > { %v1730_v10 = vsel %vm678_vm0, %v1729_v55, %v273_v24  ;;  %v1731_v63 = vrot.slane %v273_v24, 4  ;;  %v1755_v24 = vrot.slane %v3356_v17, 4 }
  0xd5   : > { %v1736_v34 = vperm.slane %v1730_v10, %v2921_v47  ;;  %v1801_v10 = vrot.slane %v3436_v31, 4 }
  0xd6   : > { %v1732_v55 = vsel %vm678_vm0, %v3044_v45, %v1731_v63  ;;  %v1813_v63 = vrot.slane %v3445_v51, 4 }
  0xd7   : > { %v1778_v42 = vsel %vm678_vm0, %v1777_v61, %v1736_v34  ;;  %v3465_v21 = vperm.slane %v1732_v55, %v2921_v47  ;;  %v1779_v56 = vrot.slane %v1736_v34, 4 }
  0xd8   : > { %526 = vperm.xlu2 %2655, %v4585_v0   ;;  %2654 = vset.pattern.permute.xlu1 %v2835_v6  ;;  %v1393_v0 = vrot.slane %v3416_v48, 4  ;;  %v3472_v3 = vperm.slane %v1778_v42, %v2979_v27 }
  0xd9   : > { %v1791_v42 = vrot.slane %v3465_v21, 4 }
  0xda   : > { %v410_v30 = vpop.permute.xlu2 %409  ;;  %v358_v46 = vpop.permute.xlu1 %357 }
  0xdb   : > { %v1405_v59 = vrot.slane %v410_v30, 4  ;;  %v1408_v50 = vsel %vm678_vm0, %v410_v30, %v1407_v26  ;;  %v1317_v4 = vrot.slane %v358_v46, 4  ;;  %v1320_v60 = vsel %vm678_vm0, %v358_v46, %v1319_v9  ;;  %v351_v38 = vpop.permute.xlu0 %350 }
  0xdc   : > { %v1328_v61 = vperm.slane %v1320_v60, %v2921_v47  ;;  %v1753_v45 = vrot.slane %v351_v38, 4  ;;  %v1756_v18 = vsel %vm678_vm0, %v351_v38, %v1755_v24  ;;  %v1416_v55 = vperm.slane %v1408_v50, %v2921_v47 }
  0xdd   : > { %v1406_v34 = vsel %vm678_vm0, %v1405_v59, %v3181_v23  ;;  %v1318_v30 = vsel %vm678_vm0, %v1317_v4, %v3172_v13  ;;  %v3480_v26 = vperm.slane %v1756_v18, %v2921_v47  ;;  %v1780_v38 = vsel %vm678_vm0, %v1748_v41, %v1779_v56 }
  0xde   : > { %v1412_v46 = vperm.slane %v1406_v34, %v2921_v47  ;;  %v1324_v60 = vperm.slane %v1318_v30, %v2921_v47  ;;  %v1365_v9 = vrot.slane %v1328_v61, 4  ;;  %v1368_v24 = vsel %vm678_vm0, %v1328_v61, %v1367_v33 }
  0xdf   : > { %v1754_v23 = vsel %vm678_vm0, %v1753_v45, %v3356_v17  ;;  %v1814_v13 = vsel %vm678_vm0, %v1813_v63, %v3480_v26  ;;  %v4641_v18 = vperm.slane %v2854_v12, 5  ;;  %v4642_v50 = vperm.slane %v2854_v12, 3 }
  0xe0   : > { %v1353_v59 = vrot.slane %v1324_v60, 4  ;;  %v1760_v4 = vperm.slane %v1754_v23, %v2921_v47  ;;  %v1356_v56 = vsel %vm678_vm0, %v1324_v60, %v1355_v44  ;;  %v1790_v41 = vsel %vm678_vm0, %v1789_v29, %v3465_v21 }
  0xe1   : > { %539 = vperm.xlu2 %2655, %v4641_v18   ;;  %519 = vperm.xlu1 %2654, %v4642_v50   ;;  %v1453_v33 = vrot.slane %v1416_v55, 4  ;;  %v1364_v17 = vperm.slane %v1356_v56, %v2979_v27  ;;  %v1366_v45 = vsel %vm678_vm0, %v1365_v9, %v3413_v39  ;;  %v1788_v63 = vperm.slane %v1780_v38, %v2979_v27 }
  0xe2   : > { %v1441_v61 = vrot.slane %v1412_v46, 4  ;;  %v371_v34 = vpop.permute.xlu1 %370  ;;  %v1354_v30 = vsel %vm678_vm0, %v1353_v59, %v3420_v35  ;;  %v1372_v23 = vperm.slane %v1366_v45, %v2979_v27  ;;  %v1802_v44 = vsel %vm678_vm0, %v1801_v10, %v1760_v4 }
  0xe3   : > { %v1394_v60 = vsel %vm678_vm0, %v1393_v0, %v371_v34  ;;  %v1395_v29 = vrot.slane %v371_v34, 4  ;;  %v1360_v18 = vperm.slane %v1354_v30, %v2979_v27  ;;  %v1376_v50 = vperm.slane %v1368_v24, %v2979_v27 }
  0xe4   : > { %v1803_v56 = vrot.slane %v1760_v4, 4  ;;  %v1400_v39 = vperm.slane %v1394_v60, %v2921_v47  ;;  %v3512_v9 = vsel %vm678_vm0, %v1364_v17, %v1383_v7  ;;  %v1381_v38 = vrot.slane %v1364_v17, 4 }
  0xe5   : > { %v1396_v35 = vsel %vm678_vm0, %v3416_v48, %v1395_v29  ;;  %v1377_v59 = vrot.slane %v1360_v18, 4  ;;  %v1380_v10 = vsel %vm678_vm0, %v1360_v18, %v1379_v15  ;;  %v1385_v45 = vrot.slane %v1372_v23, 4 }
  0xe6   : > { %v1404_v0 = vperm.slane %v1396_v35, %v2921_v47  ;;  %v3519_v34 = vsel %vm678_vm0, %v1441_v61, %v1400_v39  ;;  %v1443_v24 = vrot.slane %v1400_v39, 4  ;;  %2181 = vrot.lane.b32.xlu0 %v1380_v10, %s2754_s27  ;;  %v3524_v7 = vsel %vm678_vm0, %v1381_v38, %v3433_v11 }
  0xe7   : > { %v3528_v48 = vsel %vm678_vm0, %v1377_v59, %v3429_v37  ;;  %v3532_v15 = vsel %vm678_vm0, %v1385_v45, %v3440_v53  ;;  %v1389_v4 = vrot.slane %v1376_v50, 4  ;;  %v1827_v17 = vrot.slane %v3472_v3, 4 }
  0xe8   : > { %4643 = vst [vmem:[#allocation41_spill] sm:$0xff] %v3528_v48  ;;  %v1455_v61 = vrot.slane %v1404_v0, 4  ;;  %v4644_v30 = vperm.slane %v2854_v12, 4  ;;  %v3539_v11 = vsel %vm678_vm0, %v1412_v46, %v1443_v24  ;;  %v3542_v60 = vsel %vm678_vm0, %v1453_v33, %v1404_v0 }
  0xe9   : > { %2657 = vset.pattern.permute.xlu2 %v2835_v6  ;;  %v4645_v37 = vrot.slane %v3440_v53, 4  ;;  %v1815_v18 = vrot.slane %v3480_v26, 4  ;;  %v3552_v39 = vsel %vm678_vm0, %v1389_v4, %v3425_v8  ;;  %v1796_v38 = vperm.slane %v1790_v41, %v2979_v27 }
  0xea   : > { %532 = vperm.xlu1 %2654, %v4644_v30   ;;  %v1820_v35 = vperm.slane %v1814_v13, %v2979_v27  ;;  %v3557_v46 = vsel %vm678_vm0, %v1416_v55, %v1455_v61  ;;  %v4646_v33 = vrot.slane %v3425_v8, 4  ;;  %v1808_v26 = vperm.slane %v1802_v44, %v2979_v27 }
  0xeb   : > { %v3547_v29 = vsel %vm678_vm0, %v1372_v23, %v4645_v37  ;;  %v1804_v23 = vsel %vm678_vm0, %v3436_v31, %v1803_v56  ;;  %v547_v59 = vperm.slane %v2854_v12, 6  ;;  %v1831_v55 = vrot.slane %v1788_v63, 4 }
  0xec   : > { %v3562_v53 = vsel %vm678_vm0, %v1376_v50, %v4646_v33  ;;  %v1812_v10 = vperm.slane %v1804_v23, %v2979_v27  ;;  %v1825_v41 = vrot.slane %v1808_v26, 4  ;;  %v3570_v13 = vsel %vm678_vm0, %v1808_v26, %v1827_v17  ;;  %v3605_v23 = vpop.permute.xlu2 %428 }
  0xed   : > { %v1835_v45 = vrot.slane %v1796_v38, 4  ;;  %v1833_v0 = vrot.slane %v1820_v35, 4  ;;  %v1792_v8 = vsel %vm678_vm0, %v3409_v52, %v1791_v42  ;;  %v1816_v56 = vsel %vm678_vm0, %v3445_v51, %v1815_v18  ;;  %v416_v42 = vpop.permute.xlu0 %415 }
  0xee   : > { %v1829_v50 = vrot.slane %v1812_v10, 4  ;;  %v3577_v31 = vsel %vm678_vm0, %v1812_v10, %v1831_v55  ;;  %v1800_v44 = vperm.slane %v1792_v8, %v2979_v27  ;;  %v1824_v21 = vperm.slane %v1816_v56, %v2979_v27 }
  0xef   : > { %4647 = vst [vmem:[#allocation42_spill] sm:$0xff] %v3577_v31  ;;  %v3583_v24 = vsel %vm678_vm0, %v1820_v35, %v1835_v45  ;;  %v3586_v4 = vsel %vm678_vm0, %v1833_v0, %v1796_v38  ;;  %v3591_v52 = vsel %vm678_vm0, %v1825_v41, %v3472_v3  ;;  %v1853_v18 = vrot.slane %v416_v42, 4 }
  0xf0   : > { %4648 = vst [vmem:[#allocation43_spill] sm:$0xff] %v3583_v24  ;;  %v3595_v17 = vsel %vm678_vm0, %v1829_v50, %v1788_v63  ;;  %v1839_v51 = vrot.slane %v1800_v44, 4  ;;  %v1837_v61 = vrot.slane %v1824_v21, 4  ;;  %v560_v3 = vperm.slane %v2854_v12, 7  ;;  %v4676_v24 = vld [vmem:[#allocation19_spill] sm:$0xff] }
  0xf1   : > { %4649 = vst [vmem:[#allocation44_spill] sm:$0xff] %v3586_v4  ;;  %558 = vperm.xlu2 %2657, %v547_v59   ;;  %v1843_v10 = vrot.slane %v3383_v28, 4 }
  0xf2   : > { %4650 = vst [vmem:[#allocation45_spill] sm:$0xff] %v3591_v52  ;;  %2656 = vset.pattern.permute.xlu1 %v2826_v1  ;;  %v390_v30 = vpop.permute.xlu1 %389  ;;  %v3598_v37 = vsel %vm678_vm0, %v1824_v21, %v1839_v51  ;;  %v3601_v35 = vsel %vm678_vm0, %v1837_v61, %v1800_v44 }
  0xf3   : > { %4651 = vst [vmem:[#allocation46_spill] sm:$0xff] %v3598_v37  ;;  %v1855_v38 = vrot.slane %v390_v30, 4  ;;  %v1854_v63 = vsel %vm678_vm0, %v1853_v18, %v390_v30  ;;  %v3634_v18 = vld [vmem:[%s4545_s1 + $0x18] sm:$0xff] }
  0xf4   : > { %4652 = vst [vmem:[#allocation47_spill] sm:$0xff] %v3601_v35  ;;  %v1860_v41 = vperm.slane %v1854_v63, %v2921_v47  ;;  %v1417_v63 = vrot.slane %v3238_v57, 4 }
  0xf5   : > { %v1856_v33 = vsel %vm678_vm0, %v416_v42, %v1855_v38  ;;  %v3619_v42 = vpop.permute.xlu2 %441  ;;  %v586_v38 = vperm.slane %v3634_v18, 1 }
  0xf6   : > { %v1864_v26 = vperm.slane %v1856_v33, %v2921_v47  ;;  %v1889_v44 = vrot.slane %v1860_v41, 4 }
  0xf8   : > { %v1901_v8 = vrot.slane %v1864_v26, 4 }
  0xf9   : > { %571 = vperm.xlu2 %2657, %v560_v3  }
  0xfa   : > { %552 = vperm.xlu1 %2656, %v547_v59   ;;  %v403_v55 = vpop.permute.xlu1 %402 }
  0xfb   : > { %v1841_v45 = vrot.slane %v403_v55, 4  ;;  %v1844_v0 = vsel %vm678_vm0, %v403_v55, %v1843_v10 }
  0xfc   : > { %v1852_v12 = vperm.slane %v1844_v0, %v2921_v47  ;;  %v4654_v0 = vperm.slane %v2863_v14, 0 }
  0xfd   : > { %v1842_v50 = vsel %vm678_vm0, %v1841_v45, %v3383_v28  ;;  %v4653_v45 = vperm.slane %v2863_v14, 2 }
  0xfe   : > { %v1848_v56 = vperm.slane %v1842_v50, %v2921_v47  ;;  %v1903_v21 = vrot.slane %v1852_v12, 4  ;;  %v3617_v59 = vsel %vm678_vm0, %v1901_v8, %v1852_v12 }
 0x100   : > { %v1891_v51 = vrot.slane %v1848_v56, 4  ;;  %v3622_v61 = vsel %vm678_vm0, %v1864_v26, %v1903_v21  ;;  %v3626_v30 = vsel %vm678_vm0, %v1889_v44, %v1848_v56 }
 0x101   : > { %2659 = vset.pattern.permute.xlu2 %v2826_v1 }
 0x102   : > { %565 = vperm.xlu1 %2656, %v560_v3   ;;  %v3629_v28 = vsel %vm678_vm0, %v1860_v41, %v1891_v51  ;;  %v462_v33 = vpop.permute.xlu2 %461 }
 0x103   : > { %v1429_v8 = vrot.slane %v462_v33, 4 }
 0x109   : > { %591 = vperm.xlu2 %2659, %v586_v38  }
 0x10a   : > { %2658 = vset.pattern.permute.xlu1 %v2835_v6  ;;  %v423_v3 = vpop.permute.xlu1 %422  ;;  %v3647_v12 = vpop.permute.xlu2 %474 }
 0x10b   : > { %v1419_v26 = vrot.slane %v423_v3, 4  ;;  %v1418_v10 = vsel %vm678_vm0, %v1417_v63, %v423_v3  ;;  %v1448_v3 = vperm.slane %v3519_v34, %v2979_v27 }
 0x10c   : > { %v1424_v55 = vperm.slane %v1418_v10, %v2921_v47  ;;  %v1464_v10 = vperm.slane %v3557_v46, %v2979_v27 }
 0x10d   : > { %v1420_v41 = vsel %vm678_vm0, %v3238_v57, %v1419_v26  ;;  %v1452_v57 = vperm.slane %v3539_v11, %v2979_v27 }
 0x10e   : > { %v1428_v50 = vperm.slane %v1420_v41, %v2921_v47  ;;  %v1467_v51 = vrot.slane %v1424_v55, 4  ;;  %v1503_v48 = vrot.slane %v1464_v10, 4 }
 0x10f   : > { %v1495_v11 = vrot.slane %v1452_v57, 4 }
 0x111   : > { %604 = vperm.xlu2 %2659, %v4653_v45   ;;  %v1479_v45 = vrot.slane %v1428_v50, 4 }
 0x112   : > { %584 = vperm.xlu1 %2658, %v4654_v0   ;;  %v436_v44 = vpop.permute.xlu1 %435 }
 0x113   : > { %v1430_v56 = vsel %vm678_vm0, %v1429_v8, %v436_v44  ;;  %v1431_v21 = vrot.slane %v436_v44, 4 }
 0x114   : > { %v1436_v63 = vperm.slane %v1430_v56, %v2921_v47  ;;  %v1460_v56 = vperm.slane %v3542_v60, %v2979_v27 }
 0x115   : > { %v1432_v26 = vsel %vm678_vm0, %v462_v33, %v1431_v21  ;;  %v1491_v33 = vrot.slane %v1448_v3, 4 }
 0x116   : > { %v1440_v41 = vperm.slane %v1432_v26, %v2921_v47  ;;  %v1465_v0 = vrot.slane %v1436_v63, 4  ;;  %v1468_v8 = vsel %vm678_vm0, %v1436_v63, %v1467_v51 }
 0x117   : > { %v1476_v44 = vperm.slane %v1468_v8, %v2979_v27 }
 0x118   : > { %v1477_v52 = vrot.slane %v1440_v41, 4  ;;  %v1466_v34 = vsel %vm678_vm0, %v1465_v0, %v1424_v55  ;;  %v1480_v46 = vsel %vm678_vm0, %v1440_v41, %v1479_v45  ;;  %v1499_v45 = vrot.slane %v1460_v56, 4 }
 0x119   : > { %2661 = vset.pattern.permute.xlu2 %v2835_v6  ;;  %v1493_v21 = vrot.slane %v1476_v44, 4  ;;  %v1472_v26 = vperm.slane %v1466_v34, %v2979_v27  ;;  %v3669_v51 = vsel %vm678_vm0, %v1476_v44, %v1495_v11  ;;  %v1488_v63 = vperm.slane %v1480_v46, %v2979_v27 }
 0x11a   : > { %597 = vperm.xlu1 %2658, %v586_v38   ;;  %v3672_v8 = vpop.permute.xlu2 %493  ;;  %v1478_v60 = vsel %vm678_vm0, %v1477_v52, %v1428_v50  ;;  %v612_v41 = vperm.slane %v3634_v18, 3  ;;  %v481_v52 = vpop.permute.xlu0 %480 }
 0x11b   : > { %v3676_v38 = vsel %vm678_vm0, %v1493_v21, %v1452_v57  ;;  %v1489_v55 = vrot.slane %v1472_v26, 4  ;;  %v3679_v0 = vsel %vm678_vm0, %v1472_v26, %v1491_v33  ;;  %v1484_v44 = vperm.slane %v1478_v60, %v2979_v27 }
 0x11c   : > { %v1501_v11 = vrot.slane %v1488_v63, 4  ;;  %v3684_v34 = vsel %vm678_vm0, %v1488_v63, %v1503_v48  ;;  %v1955_v21 = vrot.slane %v481_v52, 4  ;;  %v1867_v48 = vrot.slane %v3605_v23, 4 }
 0x11d   : > { %v3687_v46 = vsel %vm678_vm0, %v1489_v55, %v1448_v3  ;;  %v3690_v50 = vsel %vm678_vm0, %v1484_v44, %v1499_v45  ;;  %v1497_v57 = vrot.slane %v1484_v44, 4 }
 0x11e   : > { %4655 = vst [vmem:[#allocation48_spill] sm:$0xff] %v3687_v46  ;;  %v3693_v33 = vsel %vm678_vm0, %v1501_v11, %v1464_v10  ;;  %v625_v10 = vperm.slane %v3634_v18, 4  ;;  %v1879_v46 = vrot.slane %v3619_v42, 4 }
 0x11f   : > { %v3697_v26 = vsel %vm678_vm0, %v1497_v57, %v1460_v56 }
 0x121   : > { %623 = vperm.xlu2 %2661, %v612_v41  }
 0x122   : > { %2660 = vset.pattern.permute.xlu1 %v2826_v1  ;;  %v507_v63 = vpop.permute.xlu2 %506  ;;  %v455_v3 = vpop.permute.xlu1 %454 }
 0x123   : > { %v1953_v60 = vrot.slane %v507_v63, 4  ;;  %v3701_v55 = vsel %vm678_vm0, %v507_v63, %v1955_v21  ;;  %v1865_v45 = vrot.slane %v455_v3, 4  ;;  %v1868_v44 = vsel %vm678_vm0, %v455_v3, %v1867_v48 }
 0x124   : > { %v1876_v57 = vperm.slane %v1868_v44, %v2921_v47  ;;  %v802_v21 = vrot.slane %v3114_v43, 4  ;;  %v790_v43 = vrot.slane %v3128_v58, 4  ;;  %v826_v44 = vrot.slane %v3130_v22, 4 }
 0x125   : > { %v3706_v11 = vsel %vm678_vm0, %v1953_v60, %v481_v52  ;;  %v1866_v56 = vsel %vm678_vm0, %v1865_v45, %v3605_v23  ;;  %v1896_v23 = vperm.slane %v3626_v30, %v2979_v27  ;;  %v1900_v60 = vperm.slane %v3629_v28, %v2979_v27 }
 0x126   : > { %v1872_v63 = vperm.slane %v1866_v56, %v2921_v47  ;;  %v1927_v35 = vrot.slane %v1876_v57, 4  ;;  %v803_v45 = vsel %vm678_vm0, %v802_v21, %v3106_v19  ;;  %v1908_v30 = vperm.slane %v3617_v59, %v2979_v27 }
 0x127   : > { %v1912_v28 = vperm.slane %v3622_v61, %v2979_v27  ;;  %v1939_v58 = vrot.slane %v1896_v23, 4  ;;  %v4656_v21 = vperm.slane %v3077_v20, 0  ;;  %v827_v61 = vsel %vm678_vm0, %v826_v44, %v3122_v36 }
 0x128   : > { %v1947_v36 = vrot.slane %v1908_v30, 4 }
 0x129   : > { %636 = vperm.xlu2 %2661, %v625_v10   ;;  %v1951_v44 = vrot.slane %v1912_v28, 4 }
 0x12a   : > { %617 = vperm.xlu1 %2660, %v612_v41   ;;  %v468_v37 = vpop.permute.xlu1 %467 }
 0x12b   : > { %v1877_v48 = vrot.slane %v468_v37, 4  ;;  %v1880_v3 = vsel %vm678_vm0, %v468_v37, %v1879_v46  ;;  %v1915_v37 = vrot.slane %v1872_v63, 4 }
 0x12c   : > { %v1888_v52 = vperm.slane %v1880_v3, %v2921_v47 }
 0x12d   : > { %v1878_v41 = vsel %vm678_vm0, %v1877_v48, %v3619_v42  ;;  %v791_v48 = vsel %vm678_vm0, %v790_v43, %v4656_v21 }
 0x12e   : > { %v1884_v46 = vperm.slane %v1878_v41, %v2921_v47  ;;  %v1925_v56 = vrot.slane %v1888_v52, 4  ;;  %v1928_v3 = vsel %vm678_vm0, %v1888_v52, %v1927_v35  ;;  %v3739_v35 = vperm.slane %v803_v45, %v2921_v47 }
 0x12f   : > { %v1943_v52 = vrot.slane %v1900_v60, 4  ;;  %v1936_v41 = vperm.slane %v1928_v3, %v2979_v27 }
 0x130   : > { %v1913_v42 = vrot.slane %v1884_v46, 4  ;;  %v1916_v19 = vsel %vm678_vm0, %v1884_v46, %v1915_v37  ;;  %v1926_v22 = vsel %vm678_vm0, %v1925_v56, %v1876_v57  ;;  %v814_v57 = vrot.slane %v3124_v2, 4 }
 0x131   : > { %2664 = vset.pattern.permute.xlu2 %v2826_v1  ;;  %v1924_v59 = vperm.slane %v1916_v19, %v2979_v27  ;;  %v651_v37 = vperm.slane %v3634_v18, 6  ;;  %v3754_v46 = vperm.slane %v791_v48, %v2921_v47  ;;  %v1949_v48 = vrot.slane %v1936_v41, 4 }
 0x132   : > { %630 = vperm.xlu1 %2660, %v625_v10   ;;  %v1914_v1 = vsel %vm678_vm0, %v1913_v42, %v1872_v63  ;;  %v1932_v10 = vperm.slane %v1926_v22, %v2979_v27  ;;  %v3757_v63 = vperm.slane %v827_v61, %v2921_v47  ;;  %v838_v42 = vrot.slane %v3739_v35, 4 }
 0x133   : > { %v1920_v20 = vperm.slane %v1914_v1, %v2979_v27  ;;  %v1941_v43 = vrot.slane %v1924_v59, 4  ;;  %v3750_v45 = vsel %vm678_vm0, %v1924_v59, %v1943_v52  ;;  %v3770_v22 = vsel %vm678_vm0, %v1936_v41, %v1951_v44  ;;  %v3774_v59 = vpop.permute.xlu2 %526 }
 0x134   : > { %4657 = vst [vmem:[#allocation49_spill] sm:$0xff] %v3750_v45  ;;  %v1945_v19 = vrot.slane %v1932_v10, 4  ;;  %v3767_v18 = vsel %vm678_vm0, %v1932_v10, %v1947_v36  ;;  %v815_v21 = vsel %vm678_vm0, %v814_v57, %v3120_v54  ;;  %v3784_v52 = vsel %vm678_vm0, %v1949_v48, %v1912_v28  ;;  %v4667_v48 = vld [vmem:[#allocation10_spill] sm:$0xff] }
 0x135   : > { %v1937_v56 = vrot.slane %v1920_v20, 4  ;;  %v3760_v3 = vsel %vm678_vm0, %v1920_v20, %v1939_v58  ;;  %v3763_v2 = vsel %vm678_vm0, %v1941_v43, %v1900_v60  ;;  %4659 = vst [vmem:[#allocation51_spill] sm:$0xff] %v3767_v18  ;;  %v3789_v1 = vperm.slane %v815_v21, %v2921_v47 }
 0x136   : > { %4658 = vst [vmem:[#allocation50_spill] sm:$0xff] %v3763_v2  ;;  %v3778_v60 = vsel %vm678_vm0, %v1945_v19, %v1908_v30  ;;  %v839_v54 = vsel %vm678_vm0, %v838_v42, %v3754_v46  ;;  %v862_v10 = vrot.slane %v3757_v63, 4  ;;  %v1062_v41 = vrot.slane %v3049_v49, 4  ;;  %v4666_v19 = vld [vmem:[#allocation11_spill] sm:$0xff] }
 0x137   : > { %4660 = vst [vmem:[#allocation52_spill] sm:$0xff] %v3770_v22  ;;  %v3781_v58 = vsel %vm678_vm0, %v1937_v56, %v1896_v23  ;;  %v3798_v23 = vperm.slane %v839_v54, %v2979_v27  ;;  %v726_v57 = vrot.slane %v2976_v25, 4  ;;  %v4664_v43 = vperm.slane %v2863_v14, 7 }
 0x138   : > { %4661 = vst [vmem:[#allocation53_spill] sm:$0xff] %v3778_v60  ;;  %v863_v28 = vsel %vm678_vm0, %v862_v10, %v3789_v1  ;;  %v4665_v36 = vperm.slane %v2863_v14, 5  ;;  %v1507_v44 = vrot.slane %v3647_v12, 4  ;;  %v1086_v21 = vrot.slane %v4666_v19, 4  ;;  %v4668_v10 = vld [vmem:[#allocation6_spill] sm:$0xff] }
 0x139   : > { %656 = vperm.xlu2 %2664, %v651_v37   ;;  %4662 = vst [vmem:[#allocation54_spill] sm:$0xff] %v3781_v58  ;;  %v3811_v56 = vperm.slane %v863_v28, %v2979_v27  ;;  %v888_v42 = vrot.slane %v3798_v23, 4  ;;  %v1063_v54 = vsel %vm678_vm0, %v1062_v41, %v4667_v48  ;;  %v727_v14 = vsel %vm678_vm0, %v726_v57, %v4668_v10  ;;  %v4671_v10 = vld [vmem:[#allocation5_spill] sm:$0xff] }
 0x13a   : > { %2663 = vset.pattern.permute.xlu1 %v2835_v6  ;;  %4663 = vst [vmem:[#allocation55_spill] sm:$0xff] %v3784_v52  ;;  %v3786_v61 = vpop.permute.xlu1 %487  ;;  %v3830_v58 = vperm.slane %v1063_v54, %v2979_v27  ;;  %v4670_v52 = vld [vmem:[#allocation8_spill] sm:$0xff]  ;;  %v3835_v48 = vperm.slane %v727_v14, %v2979_v27  ;;  %v864_v18 = vrot.slane %v3789_v1, 4 }
 0x13b   : > { %v1519_v6 = vrot.slane %v3786_v61, 4  ;;  %v3815_v49 = vpop.permute.xlu2 %539  ;;  %v889_v19 = vsel %vm678_vm0, %v3811_v56, %v888_v42  ;;  %v1087_v41 = vsel %vm678_vm0, %v1086_v21, %v4670_v52 }
 0x13c   : > { %v3848_v52 = vperm.slane %v1087_v41, %v2979_v27  ;;  %v1112_v21 = vrot.slane %v3830_v58, 4  ;;  %v776_v14 = vrot.slane %v3835_v48, 4 }
 0x13d   : > { %v1520_v30 = vsel %vm678_vm0, %v3303_v16, %v1519_v6  ;;  %v4669_v6 = vld [vmem:[#allocation7_spill] sm:$0xff] }
 0x13e   : > { %v1528_v20 = vperm.slane %v1520_v30, %v2921_v47  ;;  %v750_v30 = vrot.slane %v4669_v6, 4 }
 0x140   : > { %v751_v6 = vsel %vm678_vm0, %v750_v30, %v4671_v10  ;;  %v4673_v10 = vld [vmem:[#allocation13_spill] sm:$0xff] }
 0x141   : > { %669 = vperm.xlu2 %2664, %v4664_v43   ;;  %v1565_v43 = vrot.slane %v1528_v20, 4  ;;  %v3852_v54 = vperm.slane %v751_v6, %v2979_v27  ;;  %v4675_v6 = vld [vmem:[#allocation16_spill] sm:$0xff] }
 0x142   : > { %649 = vperm.xlu1 %2663, %v4665_v36   ;;  %v3817_v25 = vpop.permute.xlu1 %500 }
 0x143   : > { %v1508_v28 = vsel %vm678_vm0, %v3817_v25, %v1507_v44  ;;  %v4672_v44 = vld [vmem:[#allocation15_spill] sm:$0xff]  ;;  %v777_v41 = vsel %vm678_vm0, %v3852_v54, %v776_v14  ;;  %v546_v14 = vpop.permute.xlu0 %545 }
 0x144   : > { %v1516_v36 = vperm.slane %v1508_v28, %v2921_v47  ;;  %v950_v22 = vrot.slane %v4672_v44, 4 }
 0x146   : > { %v1567_v57 = vrot.slane %v1516_v36, 4  ;;  %v3841_v28 = vsel %vm678_vm0, %v1565_v43, %v1516_v36  ;;  %v951_v43 = vsel %vm678_vm0, %v950_v22, %v4673_v10  ;;  %v1964_v22 = vperm.slane %v3701_v55, %v2921_v47 }
 0x147   : > { %v1967_v10 = vrot.slane %v3672_v8, 4  ;;  %v1960_v55 = vperm.slane %v3706_v11, %v2921_v47 }
 0x148   : > { %v3845_v42 = vsel %vm678_vm0, %v1528_v20, %v1567_v57  ;;  %v1113_v20 = vsel %vm678_vm0, %v3848_v52, %v1112_v21  ;;  %v3864_v57 = vperm.slane %v951_v43, %v2979_v27  ;;  %v2015_v4 = vrot.slane %v1964_v22, 4 }
 0x149   : > { %1132 = vrot.lane.b32.xlu2 %v889_v19, %s2754_s27  ;;  %v840_v19 = vrot.slane %v3754_v46, 4  ;;  %v1002_v46 = vrot.slane %v3175_v62, 4  ;;  %v865_v62 = vsel %vm678_vm0, %v3757_v63, %v864_v18  ;;  %v2003_v60 = vrot.slane %v1960_v55, 4 }
 0x14a   : > { %662 = vperm.xlu1 %2663, %v651_v37   ;;  %v4674_v37 = vld [vmem:[#allocation18_spill] sm:$0xff]  ;;  %v1000_v1 = vrot.slane %v3864_v57, 4  ;;  %v873_v18 = vperm.slane %v865_v62, %v2979_v27 }
 0x14b   : > { %v559_v30 = vpop.permute.xlu2 %558  ;;  %v974_v36 = vrot.slane %v4674_v37, 4  ;;  %v841_v21 = vsel %vm678_vm0, %v3739_v35, %v840_v19  ;;  %v1991_v37 = vrot.slane %v546_v14, 4  ;;  %v1003_v31 = vsel %vm678_vm0, %v1002_v46, %v4676_v24 }
 0x14c   : > { %v849_v19 = vperm.slane %v841_v21, %v2979_v27 }
 0x14d   : > { %v975_v44 = vsel %vm678_vm0, %v974_v36, %v4675_v6 }
 0x14e   : > { %v3878_v43 = vperm.slane %v975_v44, %v2979_v27  ;;  %v892_v2 = vrot.slane %v849_v19, 4 }
 0x150   : > { %v1001_v63 = vsel %vm678_vm0, %v3878_v43, %v1000_v1  ;;  %v1977_v1 = vrot.slane %v559_v30, 4 }
 0x151   : > { %1136 = vrot.lane.b32.xlu2 %v1113_v20, %s2754_s27 }
 0x152   : > { %1130 = vrot.lane.b32.xlu1 %v777_v41, %s2754_s27 }
 0x153   : > { %v572_v36 = vpop.permute.xlu2 %571  ;;  %v520_v20 = vpop.permute.xlu1 %519 }
 0x154   : > { %v1989_v41 = vrot.slane %v572_v36, 4  ;;  %v1965_v6 = vrot.slane %v520_v20, 4  ;;  %v1968_v35 = vsel %vm678_vm0, %v520_v20, %v1967_v10  ;;  %v1992_v10 = vsel %vm678_vm0, %v572_v36, %v1991_v37 }
 0x155   : > { %v1976_v44 = vperm.slane %v1968_v35, %v2921_v47  ;;  %v2000_v37 = vperm.slane %v1992_v10, %v2921_v47  ;;  %v890_v36 = vrot.slane %v873_v18, 4 }
 0x156   : > { %v1990_v45 = vsel %vm678_vm0, %v1989_v41, %v546_v14  ;;  %v1966_v11 = vsel %vm678_vm0, %v1965_v6, %v3672_v8 }
 0x157   : > { %v1972_v21 = vperm.slane %v1966_v11, %v2921_v47  ;;  %v2013_v20 = vrot.slane %v1976_v44, 4  ;;  %v2016_v35 = vsel %vm678_vm0, %v1976_v44, %v2015_v4  ;;  %v1996_v24 = vperm.slane %v1990_v45, %v2921_v47 }
 0x158   : > { %v893_v11 = vsel %vm678_vm0, %v873_v18, %v892_v2  ;;  %v2024_v18 = vperm.slane %v2016_v35, %v2979_v27 }
 0x159   : > { %v2001_v46 = vrot.slane %v1972_v21, 4  ;;  %1150 = vrot.lane.b32.xlu2 %v1003_v31, %s2748_s18  ;;  %v2004_v8 = vsel %vm678_vm0, %v1972_v21, %v2003_v60  ;;  %v2014_v14 = vsel %vm678_vm0, %v2013_v20, %v1964_v22  ;;  %v2025_v44 = vrot.slane %v1996_v24, 4 }
 0x15a   : > { %1134 = vrot.lane.b32.xlu1 %v1001_v63, %s2754_s27  ;;  %v2037_v60 = vrot.slane %v2000_v37, 4  ;;  %v891_v63 = vsel %vm678_vm0, %v890_v36, %v849_v19  ;;  %v2012_v10 = vperm.slane %v2004_v8, %v2979_v27  ;;  %v4677_v8 = vld [vmem:[#allocation12_spill] sm:$0xff] }
 0x15b   : > { %v2002_v41 = vsel %vm678_vm0, %v2001_v46, %v1960_v55  ;;  %v2020_v46 = vperm.slane %v2014_v14, %v2979_v27  ;;  %v780_v36 = vrot.slane %v4677_v8, 4 }
 0x15c   : > { %v533_v62 = vpop.permute.xlu1 %532  ;;  %v2008_v45 = vperm.slane %v2002_v41, %v2979_v27 }
 0x15d   : > { %v1978_v4 = vsel %vm678_vm0, %v1977_v1, %v533_v62  ;;  %v1979_v6 = vrot.slane %v533_v62, 4  ;;  %v782_v1 = vrot.slane %v3284_v32, 4 }
 0x15e   : > { %v1984_v31 = vperm.slane %v1978_v4, %v2921_v47  ;;  %v2051_v41 = vrot.slane %v2008_v45, 4  ;;  %v2055_v4 = vrot.slane %v2012_v10, 4 }
 0x15f   : > { %v1980_v22 = vsel %vm678_vm0, %v559_v30, %v1979_v6 }
 0x160   : > { %v1988_v21 = vperm.slane %v1980_v22, %v2921_v47  ;;  %v2027_v55 = vrot.slane %v1984_v31, 4  ;;  %v2026_v20 = vsel %vm678_vm0, %v2025_v44, %v1984_v31  ;;  %v783_v22 = vsel %vm678_vm0, %v782_v1, %v3257_v40 }
 0x161   : > { %v2032_v62 = vperm.slane %v2026_v20, %v2979_v27  ;;  %1164 = vrot.lane.b32.xlu2 %v893_v11, %s2749_s20  ;;  %v2059_v11 = vrot.slane %v2020_v46, 4  ;;  %v4679_v20 = vld [vmem:[#allocation9_spill] sm:$0xff] }
 0x162   : > { %v2039_v2 = vrot.slane %v1988_v21, 4  ;;  %1148 = vrot.lane.b32.xlu1 %v891_v63, %s2748_s18  ;;  %v2028_v30 = vsel %vm678_vm0, %v1996_v24, %v2027_v55  ;;  %v2038_v19 = vsel %vm678_vm0, %v2037_v60, %v1988_v21  ;;  %v2063_v55 = vrot.slane %v2024_v18, 4 }
 0x163   : > { %v3925_v14 = vsel %vm678_vm0, %v2032_v62, %v2051_v41  ;;  %v2036_v32 = vperm.slane %v2028_v30, %v2979_v27  ;;  %v2049_v6 = vrot.slane %v2032_v62, 4  ;;  %v2044_v44 = vperm.slane %v2038_v19, %v2979_v27  ;;  %v4680_v30 = vld [vmem:[#allocation33_spill] sm:$0xff] }
 0x164   : > { %v2040_v31 = vsel %vm678_vm0, %v2000_v37, %v2039_v2  ;;  %v781_v62 = vsel %vm678_vm0, %v4679_v20, %v780_v36  ;;  %v962_v37 = vrot.slane %v3338_v5, 4  ;;  %v986_v19 = vrot.slane %v4680_v30, 4  ;;  %v4685_v5 = vld [vmem:[#allocation34_spill] sm:$0xff]  ;;  %v3981_v30 = vpop.permute.xlu2 %591 }
 0x165   : > { %v3931_v24 = vsel %vm678_vm0, %v2036_v32, %v2055_v4  ;;  %v2053_v60 = vrot.slane %v2036_v32, 4  ;;  %v2048_v35 = vperm.slane %v2040_v31, %v2979_v27  ;;  %v2057_v63 = vrot.slane %v2044_v44, 4  ;;  %v4686_v4 = vld [vmem:[#allocation17_spill] sm:$0xff]  ;;  %v4690_v20 = vld [vmem:[#allocation14_spill] sm:$0xff] }
 0x166   : > { %v3937_v21 = vsel %vm678_vm0, %v2044_v44, %v2059_v11  ;;  %v3953_v1 = vsel %vm678_vm0, %v2049_v6, %v2008_v45  ;;  %v1517_v32 = vrot.slane %v3303_v16, 4  ;;  %v4687_v44 = vld [vmem:[#allocation32_spill] sm:$0xff]  ;;  %v1531_v16 = vrot.slane %v3774_v59, 4 }
 0x167   : > { %4678 = vst [vmem:[#allocation11_spill] sm:$0xff] %v3937_v21  ;;  %v3943_v41 = vsel %vm678_vm0, %v2053_v60, %v2012_v10  ;;  %v2061_v2 = vrot.slane %v2048_v35, 4  ;;  %v3947_v8 = vsel %vm678_vm0, %v2057_v63, %v2020_v46  ;;  %v3950_v40 = vsel %vm678_vm0, %v2048_v35, %v2063_v55  ;;  %v4688_v60 = vld [vmem:[#allocation30_spill] sm:$0xff]  ;;  %v4689_v63 = vld [vmem:[#allocation31_spill] sm:$0xff] }
 0x168   : > { %4681 = vst [vmem:[#allocation10_spill] sm:$0xff] %v3947_v8  ;;  %v1118_v10 = vrot.slane %v4685_v5, 4  ;;  %v1116_v46 = vrot.slane %v4686_v4, 4  ;;  %v963_v31 = vsel %vm678_vm0, %v962_v37, %v4687_v44  ;;  %v987_v45 = vsel %vm678_vm0, %v986_v19, %v4688_v60 }
 0x169   : > { %4682 = vst [vmem:[#allocation6_spill] sm:$0xff] %v3950_v40  ;;  %v3957_v36 = vsel %vm678_vm0, %v2061_v2, %v2024_v18  ;;  %1178 = vrot.lane.b32.xlu2 %v783_v22, %s2750_s23  ;;  %v1518_v18 = vsel %vm678_vm0, %v1517_v32, %v3786_v61  ;;  %v1505_v6 = vrot.slane %v3817_v25, 4  ;;  %v969_v35 = vperm.slane %v963_v31, %v2979_v27 }
 0x16a   : > { %4683 = vst [vmem:[#allocation7_spill] sm:$0xff] %v3953_v1  ;;  %1162 = vrot.lane.b32.xlu1 %v781_v62, %s2749_s20  ;;  %v1119_v55 = vsel %vm678_vm0, %v1118_v10, %v4689_v63  ;;  %v1117_v62 = vsel %vm678_vm0, %v4690_v20, %v1116_v46  ;;  %v993_v37 = vperm.slane %v987_v45, %v2979_v27  ;;  %v1543_v32 = vrot.slane %v3815_v49, 4 }
 0x16b   : > { %4684 = vst [vmem:[#allocation8_spill] sm:$0xff] %v3957_v36  ;;  %v3979_v2 = vperm.slane %v1518_v18, %v2921_v47  ;;  %v1506_v61 = vsel %vm678_vm0, %v1505_v6, %v3647_v12  ;;  %v1008_v19 = vrot.slane %v969_v35, 4  ;;  %v1576_v60 = vperm.slane %v3845_v42, %v2979_v27 }
 0x16c   : > { %v553_v11 = vpop.permute.xlu1 %552  ;;  %v1006_v10 = vrot.slane %v993_v37, 4  ;;  %v3991_v44 = vperm.slane %v1506_v61, %v2921_v47  ;;  %v4692_v61 = vld [vmem:[#allocation25_spill] sm:$0xff] }
 0x16d   : > { %v1532_v22 = vsel %vm678_vm0, %v553_v11, %v1531_v16  ;;  %v1529_v5 = vrot.slane %v553_v11, 4  ;;  %v1553_v4 = vrot.slane %v3979_v2, 4  ;;  %v1009_v18 = vsel %vm678_vm0, %v993_v37, %v1008_v19 }
 0x16e   : > { %v1540_v25 = vperm.slane %v1532_v22, %v2921_v47  ;;  %v1572_v11 = vperm.slane %v3841_v28, %v2979_v27  ;;  %v1007_v63 = vsel %vm678_vm0, %v1006_v10, %v969_v35  ;;  %v1615_v19 = vrot.slane %v1576_v60, 4  ;;  %v4693_v10 = vld [vmem:[#allocation40_spill] sm:$0xff] }
 0x16f   : > { %v1530_v6 = vsel %vm678_vm0, %v1529_v5, %v3774_v59  ;;  %v1554_v28 = vsel %vm678_vm0, %v1553_v4, %v3991_v44  ;;  %v4014_v5 = vpop.permute.xlu2 %604 }
 0x170   : > { %v1591_v45 = vrot.slane %v1540_v25, 4 }
 0x171   : > { %1184 = vrot.lane.b32.xlu2 %v1119_v55, %s2750_s23  ;;  %v4691_v55 = vld [vmem:[#allocation23_spill] sm:$0xff] }
 0x172   : > { %1168 = vrot.lane.b32.xlu1 %v1117_v62, %s2749_s20  ;;  %v740_v20 = vrot.slane %v4691_v55, 4  ;;  %v4696_v55 = vld [vmem:[#allocation22_spill] sm:$0xff] }
 0x174   : > { %v566_v46 = vpop.permute.xlu1 %565 }
 0x175   : > { %v1541_v31 = vrot.slane %v566_v46, 4  ;;  %v1544_v12 = vsel %vm678_vm0, %v566_v46, %v1543_v32  ;;  %v764_v32 = vrot.slane %v4692_v61, 4  ;;  %v898_v46 = vrot.slane %v4693_v10, 4  ;;  %v4697_v10 = vld [vmem:[#allocation38_spill] sm:$0xff] }
 0x176   : > { %v1552_v16 = vperm.slane %v1544_v12, %v2921_v47  ;;  %v4694_v12 = vld [vmem:[#allocation24_spill] sm:$0xff] }
 0x177   : > { %v1542_v22 = vsel %vm678_vm0, %v1541_v31, %v3815_v49  ;;  %v4017_v49 = vperm.slane %v1530_v6, %v2921_v47  ;;  %v896_v4 = vrot.slane %v4694_v12, 4  ;;  %v765_v61 = vsel %vm678_vm0, %v4696_v55, %v764_v32 }
 0x178   : > { %v4007_v42 = vperm.slane %v1542_v22, %v2921_v47  ;;  %v1589_v62 = vrot.slane %v1552_v16, 4  ;;  %v1592_v37 = vsel %vm678_vm0, %v1552_v16, %v1591_v45  ;;  %v4695_v45 = vld [vmem:[#allocation20_spill] sm:$0xff] }
 0x179   : > { %v1600_v59 = vperm.slane %v1592_v37, %v2979_v27  ;;  %1198 = vrot.lane.b32.xlu2 %v1009_v18, %s2751_s24  ;;  %v741_v16 = vsel %vm678_vm0, %v4695_v45, %v740_v20 }
 0x17a   : > { %v1577_v35 = vrot.slane %v4007_v42, 4  ;;  %1182 = vrot.lane.b32.xlu1 %v1007_v63, %s2750_s23  ;;  %v1590_v31 = vsel %vm678_vm0, %v1589_v62, %v1540_v25  ;;  %v1611_v63 = vrot.slane %v1572_v11, 4  ;;  %v4036_v25 = vperm.slane %v1554_v28, %v2979_v27 }
 0x17b   : > { %v1596_v22 = vperm.slane %v1590_v31, %v2979_v27  ;;  %v4029_v6 = vsel %vm678_vm0, %v1600_v59, %v1615_v19  ;;  %v1613_v37 = vrot.slane %v1600_v59, 4  ;;  %v899_v31 = vsel %vm678_vm0, %v898_v46, %v4697_v10  ;;  %v4700_v10 = vld [vmem:[#allocation29_spill] sm:$0xff] }
 0x17c   : > { %v1578_v18 = vsel %vm678_vm0, %v1577_v35, %v4017_v49  ;;  %v749_v19 = vperm.slane %v741_v16, %v2979_v27  ;;  %v4698_v35 = vld [vmem:[#allocation21_spill] sm:$0xff]  ;;  %v773_v28 = vperm.slane %v765_v61, %v2979_v27  ;;  %v1100_v16 = vrot.slane %v4700_v10, 4 }
 0x17d   : > { %v4039_v62 = vperm.slane %v1578_v18, %v2979_v27  ;;  %v1609_v20 = vrot.slane %v1596_v22, 4  ;;  %v4045_v12 = vsel %vm678_vm0, %v1596_v22, %v1611_v63  ;;  %v4048_v32 = vsel %vm678_vm0, %v1613_v37, %v1576_v60  ;;  %v4699_v18 = vld [vmem:[#allocation27_spill] sm:$0xff]  ;;  %v611_v60 = vpop.permute.xlu0 %610  ;;  %v624_v63 = vpop.permute.xlu2 %623 }
 0x17e   : > { %v897_v59 = vsel %vm678_vm0, %v4698_v35, %v896_v4  ;;  %v1076_v46 = vrot.slane %v4699_v18, 4  ;;  %v788_v4 = vrot.slane %v749_v19, 4  ;;  %v2065_v61 = vrot.slane %v611_v60, 4  ;;  %v4703_v18 = vld [vmem:[#allocation28_spill] sm:$0xff] }
 0x17f   : > { %v1601_v45 = vrot.slane %v4039_v62, 4  ;;  %v4055_v55 = vsel %vm678_vm0, %v1609_v20, %v1572_v11  ;;  %v786_v37 = vrot.slane %v773_v28, 4  ;;  %v4702_v11 = vld [vmem:[#allocation26_spill] sm:$0xff]  ;;  %v1101_v10 = vsel %vm678_vm0, %v4703_v18, %v1100_v16 }
 0x180   : > { %v1077_v20 = vsel %vm678_vm0, %v4702_v11, %v1076_v46  ;;  %v2077_v46 = vrot.slane %v624_v63, 4 }
 0x181   : > { %v4061_v22 = vsel %vm678_vm0, %v1601_v45, %v4036_v25  ;;  %1212 = vrot.lane.b32.xlu2 %v899_v31, %s2752_s25  ;;  %v789_v45 = vsel %vm678_vm0, %v773_v28, %v788_v4  ;;  %v787_v40 = vsel %vm678_vm0, %v786_v37, %v749_v19  ;;  %v1085_v31 = vperm.slane %v1077_v20, %v2979_v27 }
 0x182   : > { %4701 = vst [vmem:[#allocation5_spill] sm:$0xff] %v4061_v22  ;;  %1196 = vrot.lane.b32.xlu1 %v897_v59, %s2751_s24  ;;  %v1109_v59 = vperm.slane %v1101_v10, %v2979_v27 }
 0x183   : > { %v1124_v16 = vrot.slane %v1085_v31, 4 }
 0x184   : > { %v585_v35 = vpop.permute.xlu1 %584  ;;  %v1122_v11 = vrot.slane %v1109_v59, 4 }
 0x185   : > { %v2067_v1 = vrot.slane %v585_v35, 4  ;;  %v2066_v22 = vsel %vm678_vm0, %v2065_v61, %v585_v35  ;;  %v4078_v28 = vpop.permute.xlu2 %636 }
 0x186   : > { %v2072_v36 = vperm.slane %v2066_v22, %v2921_v47 }
 0x187   : > { %v2068_v21 = vsel %vm678_vm0, %v611_v60, %v2067_v1  ;;  %v1125_v60 = vsel %vm678_vm0, %v1109_v59, %v1124_v16  ;;  %v4704_v59 = vld [vmem:[#allocation37_spill] sm:$0xff] }
 0x188   : > { %v2076_v4 = vperm.slane %v2068_v21, %v2921_v47  ;;  %v2115_v35 = vrot.slane %v2072_v36, 4 }
 0x189   : > { %1226 = vrot.lane.b32.xlu2 %v789_v45, %s2753_s26 }
 0x18a   : > { %1210 = vrot.lane.b32.xlu1 %v787_v40, %s2752_s25  ;;  %v1123_v40 = vsel %vm678_vm0, %v1122_v11, %v1085_v31  ;;  %v2127_v20 = vrot.slane %v2076_v4, 4  ;;  %v1012_v31 = vrot.slane %v4704_v59, 4  ;;  %v4707_v59 = vld [vmem:[#allocation39_spill] sm:$0xff] }
 0x18c   : > { %v598_v19 = vpop.permute.xlu1 %597 }
 0x18d   : > { %v2078_v61 = vsel %vm678_vm0, %v2077_v46, %v598_v19  ;;  %v2079_v37 = vrot.slane %v598_v19, 4  ;;  %v4705_v19 = vld [vmem:[#allocation36_spill] sm:$0xff] }
 0x18e   : > { %v2084_v1 = vperm.slane %v2078_v61, %v2921_v47  ;;  %v1619_v61 = vrot.slane %v4705_v19, 4 }
 0x18f   : > { %v2080_v22 = vsel %vm678_vm0, %v624_v63, %v2079_v37  ;;  %v1603_v37 = vrot.slane %v4036_v25, 4 }
 0x190   : > { %v2088_v18 = vperm.slane %v2080_v22, %v2921_v47  ;;  %v2113_v10 = vrot.slane %v2084_v1, 4  ;;  %v4088_v45 = vsel %vm678_vm0, %v2084_v1, %v2115_v35  ;;  %v4706_v35 = vld [vmem:[#allocation35_spill] sm:$0xff]  ;;  %v1617_v22 = vrot.slane %v4014_v5, 4 }
 0x191   : > { %1232 = vrot.lane.b32.xlu2 %v1125_v60, %s2753_s26  ;;  %v1013_v1 = vsel %vm678_vm0, %v4706_v35, %v1012_v31  ;;  %v1604_v60 = vsel %vm678_vm0, %v4039_v62, %v1603_v37  ;;  %v1655_v31 = vrot.slane %v4707_v59, 4 }
 0x192   : > { %v2125_v21 = vrot.slane %v2088_v18, 4  ;;  %1216 = vrot.lane.b32.xlu1 %v1123_v40, %s2752_s25  ;;  %v4093_v46 = vsel %vm678_vm0, %v2113_v10, %v2072_v36  ;;  %v4096_v63 = vsel %vm678_vm0, %v2088_v18, %v2127_v20  ;;  %v1620_v36 = vsel %vm678_vm0, %v4014_v5, %v1619_v61 }
 0x193   : > { %v657_v16 = vpop.permute.xlu2 %656  ;;  %v1628_v40 = vperm.slane %v1620_v36, %v2921_v47  ;;  %v1618_v18 = vsel %vm678_vm0, %v1617_v22, %v4705_v19 }
 0x194   : > { %v4100_v11 = vsel %vm678_vm0, %v2125_v21, %v2076_v4  ;;  %v1631_v4 = vrot.slane %v3981_v30, 4 }
 0x195   : > { %v1679_v61 = vrot.slane %v1628_v40, 4 }
 0x199   : > { %2185 = vrot.lane.b32.xlu2 %v1604_v60, %s2754_s27 }
 0x19a   : > { %1230 = vrot.lane.b32.xlu1 %v1013_v1, %s2753_s26  ;;  %v1624_v1 = vperm.slane %v1618_v18, %v2921_v47 }
 0x19b   : > { %v670_v25 = vpop.permute.xlu2 %669 }
 0x19c   : > { %v618_v20 = vpop.permute.xlu1 %617  ;;  %v1653_v10 = vrot.slane %v670_v25, 4  ;;  %v1656_v36 = vsel %vm678_vm0, %v670_v25, %v1655_v31  ;;  %v1667_v25 = vrot.slane %v1624_v1, 4 }
 0x19d   : > { %v1629_v21 = vrot.slane %v618_v20, 4  ;;  %v1632_v5 = vsel %vm678_vm0, %v618_v20, %v1631_v4  ;;  %v1664_v18 = vperm.slane %v1656_v36, %v2921_v47  ;;  %v1555_v36 = vrot.slane %v3991_v44, 4 }
 0x19e   : > { %v1640_v62 = vperm.slane %v1632_v5, %v2921_v47  ;;  %v1654_v37 = vsel %vm678_vm0, %v1653_v10, %v4707_v59  ;;  %v1641_v10 = vrot.slane %v657_v16, 4 }
 0x19f   : > { %v1630_v35 = vsel %vm678_vm0, %v1629_v21, %v3981_v30  ;;  %v1660_v4 = vperm.slane %v1654_v37, %v2921_v47  ;;  %v1579_v21 = vrot.slane %v4017_v49, 4 }
 0x1a0   : > { %v1636_v19 = vperm.slane %v1630_v35, %v2921_v47  ;;  %v1677_v22 = vrot.slane %v1640_v62, 4  ;;  %v1680_v60 = vsel %vm678_vm0, %v1640_v62, %v1679_v61  ;;  %v4139_v62 = vpop.permute.xlu0 %675 }
 0x1a1   : > { %2199 = vrot.lane.b32.xlu2 %v3676_v38, %s2748_s18  ;;  %v1689_v37 = vrot.slane %v1660_v4, 4  ;;  %v1580_v49 = vsel %vm678_vm0, %v4007_v42, %v1579_v21 }
 0x1a2   : > { %v1665_v20 = vrot.slane %v1636_v19, 4  ;;  %2183 = vrot.lane.b32.xlu1 %v3679_v0, %s2754_s27  ;;  %v1678_v30 = vsel %vm678_vm0, %v1677_v22, %v1628_v40  ;;  %v1668_v35 = vsel %vm678_vm0, %v1636_v19, %v1667_v25  ;;  %v1701_v22 = vrot.slane %v1664_v18, 4 }
 0x1a3   : > { %v4136_v59 = vpop.permute.xlu2 %1132  ;;  %v1676_v19 = vperm.slane %v1668_v35, %v2979_v27  ;;  %v1588_v25 = vperm.slane %v1580_v49, %v2979_v27 }
 0x1a4   : > { %v631_v5 = vpop.permute.xlu1 %630  ;;  %v1666_v31 = vsel %vm678_vm0, %v1665_v20, %v1624_v1 }
 0x1a5   : > { %v1642_v38 = vsel %vm678_vm0, %v1641_v10, %v631_v5  ;;  %v1643_v61 = vrot.slane %v631_v5, 4  ;;  %v1672_v0 = vperm.slane %v1666_v31, %v2979_v27  ;;  %v1684_v5 = vperm.slane %v1678_v30, %v2979_v27 }
 0x1a6   : > { %v1648_v40 = vperm.slane %v1642_v38, %v2921_v47  ;;  %v1688_v30 = vperm.slane %v1680_v60, %v2979_v27 }
 0x1a7   : > { %v1644_v1 = vsel %vm678_vm0, %v657_v16, %v1643_v61  ;;  %v1715_v38 = vrot.slane %v1672_v0, 4 }
 0x1a8   : > { %v1652_v20 = vperm.slane %v1644_v1, %v2921_v47  ;;  %v1691_v8 = vrot.slane %v1648_v40, 4  ;;  %v1690_v10 = vsel %vm678_vm0, %v1689_v37, %v1648_v40  ;;  %v1727_v1 = vrot.slane %v1688_v30, 4 }
 0x1a9   : > { %v1696_v31 = vperm.slane %v1690_v10, %v2979_v27  ;;  %2213 = vrot.lane.b32.xlu2 %v3512_v9, %s2749_s20  ;;  %v4178_v10 = vpop.permute.xlu0 %1146 }
 0x1aa   : > { %v1703_v42 = vrot.slane %v1652_v20, 4  ;;  %2197 = vrot.lane.b32.xlu1 %v3524_v7, %s2748_s18  ;;  %v1692_v44 = vsel %vm678_vm0, %v1660_v4, %v1691_v8  ;;  %v1702_v16 = vsel %vm678_vm0, %v1701_v22, %v1652_v20  ;;  %v1723_v7 = vrot.slane %v1684_v5, 4 }
 0x1ab   : > { %v1713_v21 = vrot.slane %v1696_v31, 4  ;;  %v1716_v61 = vsel %vm678_vm0, %v1696_v31, %v1715_v38  ;;  %v1700_v37 = vperm.slane %v1692_v44, %v2979_v27  ;;  %v1708_v40 = vperm.slane %v1702_v16, %v2979_v27  ;;  %v4165_v35 = vpop.permute.xlu2 %1136 }
 0x1ac   : > { %2187 = vrot.lane.b32.xlu0 %v1716_v61, %s2754_s27  ;;  %v1704_v9 = vsel %vm678_vm0, %v1664_v18, %v1703_v42  ;;  %v1556_v8 = vsel %vm678_vm0, %v3979_v2, %v1555_v36  ;;  %v1719_v31 = vrot.slane %v1676_v19, 4  ;;  %v1605_v38 = vrot.slane %v1588_v25, 4 }
 0x1ad   : > { %v1717_v49 = vrot.slane %v1700_v37, 4  ;;  %v1721_v4 = vrot.slane %v1708_v40, 4  ;;  %v1712_v60 = vperm.slane %v1704_v9, %v2979_v27  ;;  %v4173_v22 = vsel %vm678_vm0, %v1708_v40, %v1723_v7 }
 0x1ae   : > { %v4176_v20 = vsel %vm678_vm0, %v1713_v21, %v1672_v0  ;;  %v1720_v36 = vsel %vm678_vm0, %v1700_v37, %v1719_v31  ;;  %v1564_v16 = vperm.slane %v1556_v8, %v2979_v27  ;;  %v2101_v37 = vrot.slane %v4139_v62, 4 }
 0x1af   : > { %v4181_v18 = vsel %vm678_vm0, %v1721_v4, %v1684_v5  ;;  %v1725_v42 = vrot.slane %v1712_v60, 4  ;;  %v4184_v2 = vsel %vm678_vm0, %v1712_v60, %v1727_v1  ;;  %v1718_v44 = vsel %vm678_vm0, %v1717_v49, %v1676_v19 }
 0x1b0   : > { %v1606_v5 = vsel %vm678_vm0, %v1605_v38, %v1564_v16  ;;  %v1607_v9 = vrot.slane %v1564_v16, 4  ;;  %v2091_v4 = vrot.slane %v4078_v28, 4  ;;  %v2132_v38 = vperm.slane %v4100_v11, %v2979_v27 }
 0x1b1   : > { %2219 = vrot.lane.b32.xlu2 %v1720_v36, %s2749_s20  ;;  %v4192_v0 = vsel %vm678_vm0, %v1725_v42, %v1688_v30  ;;  %v4201_v7 = vpop.permute.xlu0 %1152  ;;  %v2120_v36 = vperm.slane %v4093_v46, %v2979_v27  ;;  %v2136_v16 = vperm.slane %v4096_v63, %v2979_v27  ;;  %v2124_v11 = vperm.slane %v4088_v45, %v2979_v27 }
 0x1b2   : > { %2203 = vrot.lane.b32.xlu1 %v1718_v44, %s2748_s18  ;;  %v1608_v30 = vsel %vm678_vm0, %v1588_v25, %v1607_v9 }
 0x1b3   : > { %v4195_v61 = vpop.permute.xlu2 %1150  ;;  %v2163_v46 = vrot.slane %v2120_v36, 4 }
 0x1b4   : > { %v650_v21 = vpop.permute.xlu1 %649  ;;  %2201 = vrot.lane.b32.xlu0 %v1606_v5, %s2748_s18 }
 0x1b5   : > { %v2103_v40 = vrot.slane %v650_v21, 4  ;;  %v2102_v49 = vsel %vm678_vm0, %v2101_v37, %v650_v21 }
 0x1b6   : > { %v2108_v60 = vperm.slane %v2102_v49, %v2921_v47 }
 0x1b7   : > { %v2104_v19 = vsel %vm678_vm0, %v4139_v62, %v2103_v40 }
 0x1b8   : > { %v2112_v8 = vperm.slane %v2104_v19, %v2921_v47  ;;  %v2137_v5 = vrot.slane %v2108_v60, 4  ;;  %v2171_v19 = vrot.slane %v2132_v38, 4 }
 0x1b9   : > { %2233 = vrot.lane.b32.xlu2 %v4055_v55, %s2750_s23  ;;  %v4236_v63 = vpop.permute.xlu0 %1166 }
 0x1ba   : > { %2217 = vrot.lane.b32.xlu1 %v1608_v30, %s2749_s20  ;;  %v2149_v42 = vrot.slane %v2112_v8, 4 }
 0x1bb   : > { %v4211_v62 = vpop.permute.xlu2 %1164 }
 0x1bc   : > { %v663_v1 = vpop.permute.xlu1 %662  ;;  %2215 = vrot.lane.b32.xlu0 %v3669_v51, %s2749_s20 }
 0x1bd   : > { %v2089_v31 = vrot.slane %v663_v1, 4  ;;  %v2092_v25 = vsel %vm678_vm0, %v663_v1, %v2091_v4 }
 0x1be   : > { %v2100_v55 = vperm.slane %v2092_v25, %v2921_v47 }
 0x1bf   : > { %v2090_v44 = vsel %vm678_vm0, %v2089_v31, %v4078_v28  ;;  %v2175_v31 = vrot.slane %v2136_v16, 4 }
 0x1c0   : > { %v2096_v51 = vperm.slane %v2090_v44, %v2921_v47  ;;  %v2150_v21 = vsel %vm678_vm0, %v2149_v42, %v2100_v55  ;;  %v2151_v40 = vrot.slane %v2100_v55, 4  ;;  %v2167_v55 = vrot.slane %v2124_v11, 4 }
 0x1c1   : > { %v2156_v37 = vperm.slane %v2150_v21, %v2979_v27  ;;  %2247 = vrot.lane.b32.xlu2 %v3690_v50, %s2751_s24 }
 0x1c2   : > { %v2139_v9 = vrot.slane %v2096_v51, 4  ;;  %2231 = vrot.lane.b32.xlu1 %v3697_v26, %s2750_s23  ;;  %v2138_v28 = vsel %vm678_vm0, %v2137_v5, %v2096_v51  ;;  %v2152_v47 = vsel %vm678_vm0, %v2112_v8, %v2151_v40 }
 0x1c3   : > { %v2144_v49 = vperm.slane %v2138_v28, %v2979_v27  ;;  %v4240_v45 = vsel %vm678_vm0, %v2156_v37, %v2171_v19  ;;  %v2169_v30 = vrot.slane %v2156_v37, 4  ;;  %v2160_v4 = vperm.slane %v2152_v47, %v2979_v27  ;;  %v4243_v1 = vpop.permute.xlu2 %1178 }
 0x1c4   : > { %2229 = vrot.lane.b32.xlu0 %v3532_v15, %s2750_s23  ;;  %v1131_v50 = vpop.permute.xlu1 %1130  ;;  %v2140_v26 = vsel %vm678_vm0, %v2108_v60, %v2139_v9 }
 0x1c5   : > { %v2148_v8 = vperm.slane %v2140_v26, %v2979_v27  ;;  %v2161_v25 = vrot.slane %v2144_v49, 4  ;;  %v2164_v42 = vsel %vm678_vm0, %v2144_v49, %v2163_v46  ;;  %v4251_v44 = vsel %vm678_vm0, %v2169_v30, %v2132_v38 }
 0x1c6   : > { %v2173_v5 = vrot.slane %v2160_v4, 4  ;;  %v4254_v51 = vsel %vm678_vm0, %v2160_v4, %v2175_v31  ;;  %v998_v49 = vrot.slane %v3878_v43, 4  ;;  %v4708_v4 = vld [vmem:[#allocation50_spill] sm:$0xff] }
 0x1c7   : > { %v2165_v21 = vrot.slane %v2148_v8, 4  ;;  %v4257_v15 = vsel %vm678_vm0, %v2148_v8, %v2167_v55  ;;  %v4260_v60 = vsel %vm678_vm0, %v2161_v25, %v2120_v36  ;;  %v1181_v36 = vpop.permute.xlu0 %1180  ;;  %v4710_v25 = vld [vmem:[#allocation49_spill] sm:$0xff]  ;;  %v4711_v55 = vld [vmem:[#allocation42_spill] sm:$0xff] }
 0x1c8   : > { %v4263_v27 = vsel %vm678_vm0, %v2173_v5, %v2136_v16 }
 0x1c9   : > { %v2166_v40 = vsel %vm678_vm0, %v2165_v21, %v2124_v11  ;;  %2261 = vrot.lane.b32.xlu2 %v3552_v39, %s2752_s25 }
 0x1ca   : > { %2245 = vrot.lane.b32.xlu1 %v3547_v29, %s2751_s24 }
 0x1cb   : > { %v4270_v38 = vpop.permute.xlu2 %1184 }
 0x1cc   : > { %2235 = vrot.lane.b32.xlu0 %v4181_v18, %s2750_s23  ;;  %v4274_v37 = vpop.permute.xlu1 %1134 }
 0x1cf   : > { %v1195_v39 = vpop.permute.xlu0 %1194 }
 0x1d1   : > { %2267 = vrot.lane.b32.xlu2 %v4192_v0, %s2752_s25 }
 0x1d2   : > { %2251 = vrot.lane.b32.xlu1 %v4173_v22, %s2751_s24 }
 0x1d3   : > { %v4280_v16 = vpop.permute.xlu2 %1198 }
 0x1d4   : > { %2249 = vrot.lane.b32.xlu0 %v4045_v12, %s2751_s24  ;;  %v1149_v29 = vpop.permute.xlu1 %1148 }
 0x1d7   : > { %v4290_v11 = vpop.permute.xlu0 %1200 }
 0x1d9   : > { %2281 = vrot.lane.b32.xlu2 %v4029_v6, %s2753_s26 }
 0x1da   : > { %2265 = vrot.lane.b32.xlu1 %v4048_v32, %s2752_s25  ;;  %v886_v32 = vrot.slane %v3811_v56, 4 }
 0x1db   : > { %v1213_v18 = vpop.permute.xlu2 %1212 }
 0x1dc   : > { %2263 = vrot.lane.b32.xlu0 %v3693_v33, %s2752_s25  ;;  %v1163_v0 = vpop.permute.xlu1 %1162  ;;  %v887_v33 = vsel %vm678_vm0, %v886_v32, %v3798_v23  ;;  %v4715_v32 = vld [vmem:[#allocation8_spill] sm:$0xff] }
 0x1dd   : > { %v1240_v23 = vsel %vm1238_vm1, %v887_v33, %v4136_v59  ;;  %v1110_v59 = vrot.slane %v3848_v52, 4  ;;  %v4716_v33 = vld [vmem:[#allocation11_spill] sm:$0xff] }
 0x1df   : > { %v1111_v47 = vsel %vm678_vm0, %v1110_v59, %v3830_v58  ;;  %v999_v58 = vsel %vm678_vm0, %v998_v49, %v3864_v57 }
 0x1e0   : > { %v1242_v30 = vsel %vm1238_vm1, %v1111_v47, %v4165_v35  ;;  %v1241_v57 = vsel %vm1238_vm1, %v999_v58, %v4274_v37 }
 0x1e1   : > { %2295 = vrot.lane.b32.xlu2 %v3760_v3, %s2754_s27  ;;  %v4305_v3 = vpop.permute.xlu0 %1214  ;;  %v1247_v35 = vsel %vm1243_vm2, %v1242_v30, %v4201_v7  ;;  %v1246_v8 = vsel %vm1243_vm2, %v1241_v57, %v4195_v61  ;;  %v4709_v7 = vld [vmem:[#allocation53_spill] sm:$0xff] }
 0x1e2   : > { %2279 = vrot.lane.b32.xlu1 %v3684_v34, %s2753_s26  ;;  %v774_v34 = vrot.slane %v3852_v54, 4  ;;  %v1251_v61 = vsel %vm1248_vm3, %v1246_v8, %v4236_v63 }
 0x1e3   : > { %v1227_v12 = vpop.permute.xlu2 %1226 }
 0x1e4   : > { %2277 = vrot.lane.b32.xlu0 %v3562_v53, %s2753_s26  ;;  %v1169_v6 = vpop.permute.xlu1 %1168 }
 0x1e9   : > { %2309 = vrot.lane.b32.xlu2 %v3595_v17, %s2748_s18  ;;  %v1245_v17 = vsel %vm1243_vm2, %v1240_v23, %v1149_v29  ;;  %v1229_v28 = vpop.permute.xlu0 %1228  ;;  %v4712_v29 = vld [vmem:[#allocation43_spill] sm:$0xff] }
 0x1ea   : > { %2293 = vrot.lane.b32.xlu1 %v3570_v13, %s2754_s27  ;;  %v775_v13 = vsel %vm678_vm0, %v774_v34, %v3835_v48  ;;  %v1250_v54 = vsel %vm1248_vm3, %v1245_v17, %v4211_v62  ;;  %v4720_v23 = vld [vmem:[#allocation47_spill] sm:$0xff] }
 0x1eb   : > { %v1233_v53 = vpop.permute.xlu2 %1232  ;;  %v1239_v22 = vsel %vm1238_vm1, %v775_v13, %v1131_v50  ;;  %v1255_v48 = vsel %vm1253_vm4, %v1250_v54, %v1181_v36 }
 0x1ec   : > { %2283 = vrot.lane.b32.xlu0 %v4184_v2, %s2753_s26  ;;  %v1183_v56 = vpop.permute.xlu1 %1182  ;;  %v1244_v19 = vsel %vm1243_vm2, %v1239_v22, %v4178_v10  ;;  %v4721_v22 = vld [vmem:[#allocation46_spill] sm:$0xff] }
 0x1ed   : > { %v1249_v46 = vsel %vm1248_vm3, %v1244_v19, %v1163_v0  ;;  %v4722_v19 = vld [vmem:[#allocation6_spill] sm:$0xff] }
 0x1ee   : > { %v1254_v10 = vsel %vm1253_vm4, %v1249_v46, %v4243_v1 }
 0x1ef   : > { %v1259_v50 = vsel %vm1258_vm5, %v1254_v10, %v1195_v39  ;;  %v4713_v39 = vld [vmem:[#allocation44_spill] sm:$0xff]  ;;  %v4723_v10 = vld [vmem:[#allocation5_spill] sm:$0xff] }
 0x1f1   : > { %2315 = vrot.lane.b32.xlu2 %v2166_v40, %s2748_s18 }
 0x1f2   : > { %2299 = vrot.lane.b32.xlu1 %v2164_v42, %s2754_s27 }
 0x1f3   : > { %v4324_v2 = vpop.permute.xlu2 %2185 }
 0x1f4   : > { %2297 = vrot.lane.b32.xlu0 %v3925_v14, %s2754_s27  ;;  %v1197_v62 = vpop.permute.xlu1 %1196 }
 0x1f5   : > { %v1260_v9 = vsel %vm1258_vm5, %v1255_v48, %v1197_v62 }
 0x1f6   : > { %v1265_v52 = vsel %vm1263_vm7, %v1260_v9, %v1213_v18 }
 0x1f7   : > { %v1270_v14 = vsel %vm1268_vm6, %v1265_v52, %v1229_v28 }
 0x1f8   : > { %1275 = vst [vmem:[%s4338_s4 + $0x10] sm:$0xff] %v1270_v14 }
 0x1f9   : > { %1276 = vst [vmem:[%s4338_s4 + $0x18] sm:$0xff] %v1270_v14  ;;  %2329 = vrot.lane.b32.xlu2 %v3931_v24, %s2749_s20  ;;  %v1252_v24 = vsel %vm1248_vm3, %v1247_v35, %v1169_v6 }
 0x1fa   : > { %2313 = vrot.lane.b32.xlu1 %v3943_v41, %s2748_s18  ;;  %v1257_v31 = vsel %vm1253_vm4, %v1252_v24, %v4270_v38  ;;  %v1256_v38 = vsel %vm1253_vm4, %v1251_v61, %v1183_v56  ;;  %v4719_v56 = vld [vmem:[#allocation55_spill] sm:$0xff]  ;;  %v4725_v24 = vld [vmem:[#allocation41_spill] sm:$0xff] }
 0x1fb   : > { %v4352_v43 = vpop.permute.xlu2 %2199  ;;  %v1262_v5 = vsel %vm1258_vm5, %v1257_v31, %v4290_v11  ;;  %v1261_v36 = vsel %vm1258_vm5, %v1256_v38, %v4280_v16 }
 0x1fc   : > { %2311 = vrot.lane.b32.xlu0 %v4708_v4, %s2748_s18  ;;  %v1211_v1 = vpop.permute.xlu1 %1210  ;;  %v1266_v63 = vsel %vm1263_vm7, %v1261_v36, %v4305_v3  ;;  %v4717_v3 = vld [vmem:[#allocation51_spill] sm:$0xff]  ;;  %v4724_v4 = vld [vmem:[#allocation48_spill] sm:$0xff]  ;;  %s2680_s18 = sshra.s32 %s2483_s15, 4  ;;  %s2681_s18 = int_to_ptr.hbm [resolvable:$true] %s2680_s18 }
 0x1fd   : > { %v1264_v26 = vsel %vm1263_vm7, %v1259_v50, %v1211_v1  ;;  %p2687_p0 = scmp.lt.s32.totalorder %s2681_s18, %s4546_s2 }
 0x1fe   : > { %v1269_v41 = vsel %vm1268_vm6, %v1264_v26, %v1227_v12  ;;  %v4714_v12 = vld [vmem:[#allocation10_spill] sm:$0xff] }
 0x1ff   : > { %1273 = vst [vmem:[%s4338_s4] sm:$0xff] %v1269_v41 }
 0x200   : > { %1274 = vst [vmem:[%s4338_s4 + $0x8] sm:$0xff] %v1269_v41 }
 0x201   : > { %2343 = vrot.lane.b32.xlu2 %v4709_v7, %s2750_s23 }
 0x202   : > { %2327 = vrot.lane.b32.xlu1 %v4710_v25, %s2749_s20 }
 0x203   : > { %v4374_v42 = vpop.permute.xlu2 %2213 }
 0x204   : > { %2325 = vrot.lane.b32.xlu0 %v4711_v55, %s2749_s20  ;;  %v1217_v21 = vpop.permute.xlu1 %1216 }
 0x205   : > { %v1267_v40 = vsel %vm1263_vm7, %v1262_v5, %v1217_v21 }
 0x206   : > { %v1272_v37 = vsel %vm1268_vm6, %v1267_v40, %v1233_v53 }
 0x207   : > { %1279 = vst [vmem:[%s4338_s4 + $0x30] sm:$0xff] %v1272_v37 }
 0x208   : > { %1280 = vst [vmem:[%s4338_s4 + $0x38] sm:$0xff] %v1272_v37 }
 0x209   : > { %2357 = vrot.lane.b32.xlu2 %v4712_v29, %s2751_s24 }
 0x20a   : > { %2341 = vrot.lane.b32.xlu1 %v4713_v39, %s2750_s23 }
 0x20b   : > { %v4393_v18 = vpop.permute.xlu2 %2219 }
 0x20c   : > { %2331 = vrot.lane.b32.xlu0 %v4257_v15, %s2749_s20  ;;  %v1231_v0 = vpop.permute.xlu1 %1230  ;;  %v2182_v15 = vpop.permute.xlu0 %2181  ;;  %s2682_s20 = scalar_lea.hbm %s2681_s18, 128 }
 0x20d   : > { %v1271_v11 = vsel %vm1268_vm6, %v1266_v63, %v1231_v0  ;;  %v2401_v41 = vsel %vm1238_vm1, %v4725_v24, %v2182_v15  ;;  %p2683_p11 = scmp.ne.s32.totalorder %s2681_s18, %s2682_s20 }
 0x20e   : > { %1277 = vst [vmem:[%s4338_s4 + $0x20] sm:$0xff] %v1271_v11 }
 0x20f   : > { %1278 = vst [vmem:[%s4338_s4 + $0x28] sm:$0xff] %v1271_v11  ;;  %p2684_p12 = pnand %p2683_p11, %p2811_p4 }
 0x211   : > { %2363 = vrot.lane.b32.xlu2 %v4240_v45, %s2751_s24  ;;  %p2685_p13 = pneg %p2684_p12 }
 0x212   : > { %2347 = vrot.lane.b32.xlu1 %v4251_v44, %s2750_s23  ;;  %v4718_v44 = vld [vmem:[#allocation52_spill] sm:$0xff] }
 0x213   : > { %v2234_v16 = vpop.permute.xlu2 %2233 }
 0x214   : > { %2345 = vrot.lane.b32.xlu0 %v4714_v12, %s2750_s23  ;;  %v2184_v6 = vpop.permute.xlu1 %2183 }
 0x215   : > { %v2402_v1 = vsel %vm1238_vm1, %v4724_v4, %v2184_v6 }
 0x216   : > { %v2406_v31 = vsel %vm1243_vm2, %v2402_v1, %v4352_v43 }
 0x219   : > { %2377 = vrot.lane.b32.xlu2 %v4715_v32, %s2752_s25 }
 0x21a   : > { %2361 = vrot.lane.b32.xlu1 %v4716_v33, %s2751_s24 }
 0x21b   : > { %v2248_v45 = vpop.permute.xlu2 %2247 }
 0x21c   : > { %2359 = vrot.lane.b32.xlu0 %v4717_v3, %s2751_s24  ;;  %v2198_v34 = vpop.permute.xlu1 %2197 }
 0x21e   : > { %v2188_v53 = vpop.permute.xlu0 %2187 }
 0x21f   : > { %v2404_v36 = vsel %vm1238_vm1, %v4176_v20, %v2188_v53 }
 0x221   : > { %2391 = vrot.lane.b32.xlu2 %v4718_v44, %s2753_s26 }
 0x222   : > { %2375 = vrot.lane.b32.xlu1 %v4719_v56, %s2752_s25 }
 0x223   : > { %v2262_v54 = vpop.permute.xlu2 %2261 }
 0x224   : > { %2373 = vrot.lane.b32.xlu0 %v4720_v23, %s2752_s25  ;;  %v2204_v17 = vpop.permute.xlu1 %2203 }
 0x225   : > { %v2408_v39 = vsel %vm1243_vm2, %v2404_v36, %v2204_v17 }
 0x226   : > { %v2202_v13 = vpop.permute.xlu0 %2201  ;;  %v2412_v11 = vsel %vm1248_vm3, %v2408_v39, %v4393_v18 }
 0x22a   : > { %2389 = vrot.lane.b32.xlu1 %v4721_v22, %s2753_s26 }
 0x22b   : > { %v2268_v62 = vpop.permute.xlu2 %2267 }
 0x22c   : > { %2379 = vrot.lane.b32.xlu0 %v4263_v27, %s2752_s25  ;;  %v2218_v59 = vpop.permute.xlu1 %2217  ;;  %v2403_v27 = vsel %vm1238_vm1, %v4723_v10, %v4324_v2  ;;  %v2405_v2 = vsel %vm1243_vm2, %v2401_v41, %v2198_v34  ;;  %s2686_s25 = scalar_lea.hbm %s4546_s2, 256 }
 0x22d   : > { %v2407_v58 = vsel %vm1243_vm2, %v2403_v27, %v2202_v13  ;;  %v2409_v21 = vsel %vm1248_vm3, %v2405_v2, %v4374_v42  ;;  %p2688_p1 = scmp.lt.s32.totalorder %s2686_s25, %s2682_s20 }
 0x22e   : > { %v2216_v48 = vpop.permute.xlu0 %2215 }
 0x22f   : > { %v2410_v25 = vsel %vm1248_vm3, %v2406_v31, %v2216_v48  ;;  %v4728_v31 = vld [vmem:[#allocation7_spill] sm:$0xff]  ;;  %p2689_p2 = por %p2688_p1, %p2687_p0 }
 0x231   : > { %p2690_p3 = pnand %p2689_p2, %p2685_p13 }
 0x232   : > { %2395 = vrot.lane.b32.xlu1 %v4254_v51, %s2753_s26  ;;  %v2411_v51 = vsel %vm1248_vm3, %v2407_v58, %v2218_v59 }
 0x233   : > { %v2282_v46 = vpop.permute.xlu2 %2281  ;;  %v2415_v50 = vsel %vm1253_vm4, %v2411_v51, %v2234_v16 }
 0x234   : > { %2393 = vrot.lane.b32.xlu0 %v4722_v19, %s2753_s26  ;;  %v2232_v9 = vpop.permute.xlu1 %2231 }
 0x235   : > { %v2414_v5 = vsel %vm1253_vm4, %v2410_v25, %v2232_v9  ;;  %v4726_v9 = vld [vmem:[#allocation54_spill] sm:$0xff] }
 0x236   : > { %v2230_v28 = vpop.permute.xlu0 %2229  ;;  %v2418_v43 = vsel %vm1258_vm5, %v2414_v5, %v2248_v45 }
 0x237   : > { %v2413_v61 = vsel %vm1253_vm4, %v2409_v21, %v2230_v28 }
 0x23b   : > { %v2296_v49 = vpop.permute.xlu2 %2295 }
 0x23c   : > { %v2246_v52 = vpop.permute.xlu1 %2245  ;;  %v2430_v28 = vsel %vm1238_vm1, %v4726_v9, %v2296_v49 }
 0x23d   : > { %v2417_v40 = vsel %vm1258_vm5, %v2413_v61, %v2246_v52 }
 0x23e   : > { %v2236_v47 = vpop.permute.xlu0 %2235  ;;  %v2421_v42 = vsel %vm1263_vm7, %v2417_v40, %v2262_v54 }
 0x23f   : > { %v2416_v12 = vsel %vm1253_vm4, %v2412_v11, %v2236_v47 }
 0x243   : > { %v2310_v55 = vpop.permute.xlu2 %2309 }
 0x244   : > { %v2252_v14 = vpop.permute.xlu1 %2251 }
 0x245   : > { %v2420_v20 = vsel %vm1258_vm5, %v2416_v12, %v2252_v14  ;;  %v4727_v14 = vld [vmem:[#allocation45_spill] sm:$0xff] }
 0x246   : > { %v2250_v30 = vpop.permute.xlu0 %2249  ;;  %v2424_v32 = vsel %vm1263_vm7, %v2420_v20, %v2268_v62 }
 0x247   : > { %v2419_v35 = vsel %vm1258_vm5, %v2415_v50, %v2250_v30 }
 0x24b   : > { %v2316_v16 = vpop.permute.xlu2 %2315 }
 0x24c   : > { %v2266_v26 = vpop.permute.xlu1 %2265 }
 0x24d   : > { %v2423_v57 = vsel %vm1263_vm7, %v2419_v35, %v2266_v26 }
 0x24e   : > { %v2427_v8 = vsel %vm1268_vm6, %v2423_v57, %v2282_v46  ;;  %v2264_v7 = vpop.permute.xlu0 %2263 }
 0x24f   : > { %2461 = vst [vmem:[%s4338_s4 + $0x60] sm:$0xff] %v2427_v8  ;;  %v2422_v38 = vsel %vm1263_vm7, %v2418_v43, %v2264_v7 }
 0x253   : > { %v2330_v3 = vpop.permute.xlu2 %2329 }
 0x254   : > { %v2280_v37 = vpop.permute.xlu1 %2279 }
 0x255   : > { %v2426_v29 = vsel %vm1268_vm6, %v2422_v38, %v2280_v37 }
 0x256   : > { %2459 = vst [vmem:[%s4338_s4 + $0x50] sm:$0xff] %v2426_v29  ;;  %v2278_v63 = vpop.permute.xlu0 %2277 }
 0x257   : > { %v2425_v0 = vsel %vm1268_vm6, %v2421_v42, %v2278_v63 }
 0x258   : > { %2457 = vst [vmem:[%s4338_s4 + $0x40] sm:$0xff] %v2425_v0 }
 0x25b   : > { %v2344_v44 = vpop.permute.xlu2 %2343 }
 0x25c   : > { %v2294_v6 = vpop.permute.xlu1 %2293 }
 0x25d   : > { %v2429_v10 = vsel %vm1238_vm1, %v4727_v14, %v2294_v6 }
 0x25e   : > { %v2284_v15 = vpop.permute.xlu0 %2283  ;;  %v2433_v49 = vsel %vm1243_vm2, %v2429_v10, %v2310_v55 }
 0x25f   : > { %v2428_v33 = vsel %vm1268_vm6, %v2424_v32, %v2284_v15 }
 0x260   : > { %2463 = vst [vmem:[%s4338_s4 + $0x70] sm:$0xff] %v2428_v33 }
 0x263   : > { %v2358_v17 = vpop.permute.xlu2 %2357 }
 0x264   : > { %v2300_v34 = vpop.permute.xlu1 %2299 }
 0x265   : > { %v2432_v24 = vsel %vm1238_vm1, %v4260_v60, %v2300_v34 }
 0x266   : > { %v2298_v45 = vpop.permute.xlu0 %2297  ;;  %v2436_v55 = vsel %vm1243_vm2, %v2432_v24, %v2316_v16 }
 0x267   : > { %v2431_v8 = vsel %vm1238_vm1, %v4728_v31, %v2298_v45 }
 0x26b   : > { %v2364_v22 = vpop.permute.xlu2 %2363 }
 0x26c   : > { %v2314_v53 = vpop.permute.xlu1 %2313 }
 0x26d   : > { %v2435_v25 = vsel %vm1243_vm2, %v2431_v8, %v2314_v53 }
 0x26e   : > { %v2312_v56 = vpop.permute.xlu0 %2311  ;;  %v2439_v61 = vsel %vm1248_vm3, %v2435_v25, %v2330_v3 }
 0x26f   : > { %v2434_v52 = vsel %vm1243_vm2, %v2430_v28, %v2312_v56 }
 0x273   : > { %v2378_v19 = vpop.permute.xlu2 %2377 }
 0x274   : > { %v2328_v23 = vpop.permute.xlu1 %2327 }
 0x275   : > { %v2438_v47 = vsel %vm1248_vm3, %v2434_v52, %v2328_v23 }
 0x276   : > { %v2326_v18 = vpop.permute.xlu0 %2325  ;;  %v2442_v27 = vsel %vm1253_vm4, %v2438_v47, %v2344_v44 }
 0x277   : > { %v2437_v35 = vsel %vm1248_vm3, %v2433_v49, %v2326_v18 }
 0x27b   : > { %v2392_v51 = vpop.permute.xlu2 %2391 }
 0x27c   : > { %v2342_v13 = vpop.permute.xlu1 %2341 }
 0x27d   : > { %v2441_v26 = vsel %vm1253_vm4, %v2437_v35, %v2342_v13 }
 0x27e   : > { %v2332_v54 = vpop.permute.xlu0 %2331  ;;  %v2445_v41 = vsel %vm1258_vm5, %v2441_v26, %v2358_v17 }
 0x27f   : > { %v2440_v60 = vsel %vm1248_vm3, %v2436_v55, %v2332_v54 }
 0x284   : > { %v2348_v59 = vpop.permute.xlu1 %2347 }
 0x285   : > { %v2444_v21 = vsel %vm1253_vm4, %v2440_v60, %v2348_v59 }
 0x286   : > { %v2346_v48 = vpop.permute.xlu0 %2345  ;;  %v2448_v38 = vsel %vm1258_vm5, %v2444_v21, %v2364_v22 }
 0x287   : > { %v2443_v40 = vsel %vm1253_vm4, %v2439_v61, %v2346_v48 }
 0x28c   : > { %v2362_v62 = vpop.permute.xlu1 %2361 }
 0x28d   : > { %v2447_v43 = vsel %vm1258_vm5, %v2443_v40, %v2362_v62 }
 0x28e   : > { %v2360_v46 = vpop.permute.xlu0 %2359  ;;  %v2451_v63 = vsel %vm1263_vm7, %v2447_v43, %v2378_v19 }
 0x28f   : > { %v2446_v30 = vsel %vm1258_vm5, %v2442_v27, %v2360_v46 }
 0x294   : > { %v2376_v58 = vpop.permute.xlu1 %2375 }
 0x295   : > { %v2450_v4 = vsel %vm1263_vm7, %v2446_v30, %v2376_v58 }
 0x296   : > { %v2454_v1 = vsel %vm1268_vm6, %v2450_v4, %v2392_v51  ;;  %v2374_v50 = vpop.permute.xlu0 %2373 }
 0x297   : > { %2460 = vst [vmem:[%s4338_s4 + $0x58] sm:$0xff] %v2454_v1  ;;  %v2449_v57 = vsel %vm1263_vm7, %v2445_v41, %v2374_v50 }
 0x29c   : > { %v2390_v2 = vpop.permute.xlu1 %2389 }
 0x29d   : > { %v2453_v7 = vsel %vm1268_vm6, %v2449_v57, %v2390_v2 }
 0x29e   : > { %2458 = vst [vmem:[%s4338_s4 + $0x48] sm:$0xff] %v2453_v7  ;;  %v2380_v5 = vpop.permute.xlu0 %2379 }
 0x29f   : > { %v2452_v37 = vsel %vm1263_vm7, %v2448_v38, %v2380_v5 }
 0x2a4   : > { %v2396_v36 = vpop.permute.xlu1 %2395 }
 0x2a5   : > { %v2456_v29 = vsel %vm1268_vm6, %v2452_v37, %v2396_v36 }
 0x2a6   : > { %2464 = vst [vmem:[%s4338_s4 + $0x78] sm:$0xff] %v2456_v29  ;;  %v2394_v39 = vpop.permute.xlu0 %2393 }
 0x2a7   : > { %v2455_v42 = vsel %vm1268_vm6, %v2451_v63, %v2394_v39 }
 0x2a8   : > { %2462 = vst [vmem:[%s4338_s4 + $0x68] sm:$0xff] %v2455_v42 }
 0x2a9   : > { %2693 = shalt.err (!%p2690_p3)
}
 0x2aa   : > { %s2755_s29 = smov 256  }
 0x2ab   : > { %2571 = dma.vmem_to_hbm [thread:$0]  (%p2811_p4), %s2481_s12, 2048, %s2483_s15, %s2466_s16, %s2755_s29, %s2755_s29, %s2754_s27  }
 0x2ac PF: > { %p2577_p5 = scmp.ge.s32.totalorder %s2744_s14, 2  ;;  %s2497_s30 = sand.u32 1, %s2724_s9  }
 0x2ad   : > { %s2498_s3 = scalar_lea.sflag [#allocation3], %s2497_s30 }
 0x2ae   : > { %p2574_p6 = pnand %p2577_p5, %p2818_p8 }
 0x2b0   : > { %p2575_p7 = pneg %p2574_p6 }
 0x2b2   : > { %2719 = dma.done.wait (%p2575_p7), %s2498_s3, 2048  }
 0x2b3   : > { %2721 = vsyncadd (%p2575_p7), %s2498_s3, 4294965248  ;;  %s15_s14 = sadd.s32 1, %s2744_s14   ;;  %s4729_s9 = smov %s2728_s10 }
 0x2b4   : > { %p12_p9 = scmp.ge.s32.totalorder %s15_s14, 4   ;;  %s4730_s10 = smov %s2732_s11 }
 0x2b5   : > { %s4731_s11 = smov %s2824_s22  ;;  %s4732_s12 = smov %s2740_s13 }
 0x2b6   : > { %s4733_s13 = smov %s4735_s17  ;;  %14 = sbr.rel (!%p12_p9) target bundleno = 4 (0x4), region = 63 }
 0x2bb   :  { %2504 = vsyncpa [#allocation3], 1 }
 0x2bc   :  { %2506 = vsyncpa [#allocation3 + $0x1], 1 }

</bundles_post_ra>
